<compile_context>
chip_gen: v5e
topology: v5e:2x2
jax: 0.10.0
libtpu: 0.0.40
codegen_flags: <defaults>
</compile_context>

<pallas_src>
import functools

import jax
import jax.numpy as jnp
from jax import lax
from jax.experimental import pallas as pl
from jax.experimental.pallas import tpu as pltpu

LANE = 128
SUBLANE = 8
VMEM = pl.BlockSpec(memory_space=pltpu.MemorySpace.VMEM)
SMEM = pl.BlockSpec(memory_space=pltpu.MemorySpace.SMEM)


def _round_up(x, m):
    return (x + m - 1) // m * m


def _pad2(a, rows, cols):
    out = jnp.zeros((rows, cols), a.dtype)
    return out.at[: a.shape[0], : a.shape[1]].set(a)


# ---------------------------------------------------------------------------
# Single fused kernel: encoder + KLD + dual GIN + pool + heads + DiffLoss + clf
# ---------------------------------------------------------------------------
def _fused_forward_kernel(x_ref, m_ref, pool_ref, enc_w_ref, enc_b_ref, *refs,
                          num_layers, h_real, h_pad, n_real):
    gin_refs = refs[:4 * num_layers]
    (loc_w_ref, loc_b_ref, glob_w_ref, glob_b_ref,
     clf_w_ref, clf_b_ref) = refs[4 * num_layers:4 * num_layers + 6]
    logits_ref, kld_ref, diff_ref = refs[4 * num_layers + 6:]

    # --- encoder Linear (bf16 MXU operands, f32 accumulate + epilogue) -------
    h = jnp.dot(x_ref[...], enc_w_ref[...],
                preferred_element_type=jnp.float32) + enc_b_ref[...]   # (Np, Hp)

    # --- kld_loss(h): torch-style unbiased std over the real node rows,
    #     mean over the real hidden columns.  exp(log(var)) == var -> no exp.
    row = lax.broadcasted_iota(jnp.int32, h.shape, 0)
    rmask = (row < n_real).astype(jnp.float32)
    hm = h * rmask
    mu = jnp.sum(hm, axis=0, keepdims=True) / n_real
    d = (h - mu) * rmask
    var = jnp.sum(d * d, axis=0, keepdims=True) / (n_real - 1)
    log_var = jnp.log(var + 1e-12)
    term = 1.0 + log_var - mu * mu - var
    col = lax.broadcasted_iota(jnp.int32, term.shape, 1)
    term = jnp.where(col < h_real, term, 0.0)
    kld_ref[0, 0] = -0.5 * jnp.sum(term) / h_real

    # --- dual-branch GIN (local | global), all layers, bf16 activation carry -
    # GINConv(eps=0): agg = (A+I) @ x ; MLP = Linear -> folded eval-BN -> ReLU
    # -> Linear.  Local/global weights are concatenated / block-diagonalised
    # along a padded 2*Hp output dim (built on the host).
    m = m_ref[...]                                     # (Np, Np) bf16, A + I
    xb = h.astype(jnp.bfloat16)                        # cast once; bf16 carry
    for i in range(num_layers):
        w0, b0, w1, b1 = gin_refs[4 * i: 4 * i + 4]
        agg = jnp.dot(m, xb,
                      preferred_element_type=jnp.float32).astype(jnp.bfloat16)
        z = jnp.dot(agg, w0[...], preferred_element_type=jnp.float32) + b0[...]
        z = jnp.maximum(z, 0.0).astype(jnp.bfloat16)   # Linear -> BN -> ReLU
        y = jnp.dot(z, w1[...], preferred_element_type=jnp.float32) + b1[...]
        if i + 1 < num_layers:
            y = jnp.maximum(y, 0.0)                    # inter-conv ReLU (p=0 dropout)
        xb = y.astype(jnp.bfloat16)                    # (Np, 2*Hp): [local | global]

    # --- add-pool (membership-mask matmul) ------------------------------------
    pooled = jnp.dot(pool_ref[...], xb,
                     preferred_element_type=jnp.float32)               # (G, 2*Hp)
    xl_p = pooled[:, :h_pad]                                           # local pooled
    xg_p = pooled[:, h_pad:]                                           # global pooled

    # --- head Linears + ReLU ---------------------------------------------------
    x_local = jnp.maximum(
        jnp.dot(xl_p.astype(jnp.bfloat16), loc_w_ref[...],
                preferred_element_type=jnp.float32) + loc_b_ref[...], 0.0)
    x_global = jnp.maximum(
        jnp.dot(xg_p.astype(jnp.bfloat16), glob_w_ref[...],
                preferred_element_type=jnp.float32) + glob_b_ref[...], 0.0)

    # --- DiffLoss on the pooled pre-head features (as the reference does) -----
    n1 = jnp.sqrt(jnp.sum(xl_p * xl_p, axis=1, keepdims=True))
    n2 = jnp.sqrt(jnp.sum(xg_p * xg_p, axis=1, keepdims=True))
    x1n = xl_p / (n1 + 1e-6)
    x2n = xg_p / (n2 + 1e-6)
    gram = lax.dot_general(x1n, x2n, (((0,), (0,)), ((), ())),
                           preferred_element_type=jnp.float32)         # (Hp, Hp)
    diff_ref[0, 0] = jnp.sum(gram * gram) / (h_real * h_real)

    # --- dropout(p, eval) no-op; classifier ------------------------------------
    logits_ref[...] = jnp.dot((x_local + x_global).astype(jnp.bfloat16),
                              clf_w_ref[...],
                              preferred_element_type=jnp.float32) + clf_b_ref[...]


# ---------------------------------------------------------------------------
# Parameter init (deterministic, synthetic) + host-side fusion/padding
# ---------------------------------------------------------------------------
def init_linear(key, fan_in, fan_out):
    kw, kb = jax.random.split(key)
    bound = 1.0 / (fan_in ** 0.5)
    w = jax.random.uniform(kw, (fan_in, fan_out), jnp.float32, -bound, bound)
    b = jax.random.uniform(kb, (fan_out,), jnp.float32, -bound, bound)
    return w, b


def init_bn_eval(key, dim):
    # eval-mode BatchNorm1d as an affine: y = x*scale + shift
    kg, kb = jax.random.split(key)
    gamma = 1.0 + 0.1 * jax.random.normal(kg, (dim,), jnp.float32)
    beta = 0.1 * jax.random.normal(kb, (dim,), jnp.float32)
    running_mean = jnp.zeros((dim,), jnp.float32)
    running_var = jnp.ones((dim,), jnp.float32)
    scale = gamma / jnp.sqrt(running_var + 1e-5)
    shift = beta - running_mean * scale
    return scale, shift


def init_params(key, in_channels, hidden, out_channels, max_depth=2):
    h_pad = _round_up(max(hidden, 1), LANE)
    in_pad = _round_up(max(in_channels, 1), LANE)
    out_pad = _round_up(max(out_channels, 1), LANE)
    keys = jax.random.split(key, 6)

    enc_w, enc_b = init_linear(keys[0], in_channels, hidden)

    def gin_branch(base_key):
        ks = jax.random.split(base_key, max_depth * 3)
        layers = []
        for i in range(max_depth):
            w0, b0 = init_linear(ks[3 * i + 0], hidden, hidden)
            w1, b1 = init_linear(ks[3 * i + 1], hidden, hidden)
            s, sh = init_bn_eval(ks[3 * i + 2], hidden)
            # fold eval-BN into the first Linear: (x@w0+b0)*s+sh == x@(w0*s)+(b0*s+sh)
            layers.append((w0 * s[None, :], b0 * s + sh, w1, b1))
        return layers

    loc_layers = gin_branch(keys[1])
    glob_layers = gin_branch(keys[2])

    # Concatenate local|global weights along a padded 2*h_pad output dim.
    # Layer 0 input is the shared h (N, h_pad); later layers are block-diagonal.
    gin_weights = []
    for i in range(max_depth):
        wl0, bl0, wl1, bl1 = loc_layers[i]
        wg0, bg0, wg1, bg1 = glob_layers[i]
        if i == 0:
            w0 = jnp.zeros((h_pad, 2 * h_pad), jnp.float32)
            w0 = w0.at[:hidden, :hidden].set(wl0)
            w0 = w0.at[:hidden, h_pad:h_pad + hidden].set(wg0)
        else:
            w0 = jnp.zeros((2 * h_pad, 2 * h_pad), jnp.float32)
            w0 = w0.at[:hidden, :hidden].set(wl0)
            w0 = w0.at[h_pad:h_pad + hidden, h_pad:h_pad + hidden].set(wg0)
        b0 = jnp.zeros((1, 2 * h_pad), jnp.float32)
        b0 = b0.at[0, :hidden].set(bl0).at[0, h_pad:h_pad + hidden].set(bg0)

        w1 = jnp.zeros((2 * h_pad, 2 * h_pad), jnp.float32)
        w1 = w1.at[:hidden, :hidden].set(wl1)
        w1 = w1.at[h_pad:h_pad + hidden, h_pad:h_pad + hidden].set(wg1)
        b1 = jnp.zeros((1, 2 * h_pad), jnp.float32)
        b1 = b1.at[0, :hidden].set(bl1).at[0, h_pad:h_pad + hidden].set(bg1)

        gin_weights += [w0.astype(jnp.bfloat16), b0,
                        w1.astype(jnp.bfloat16), b1]

    glob_w, glob_b = init_linear(keys[3], hidden, hidden)
    loc_w, loc_b = init_linear(keys[4], hidden, hidden)
    clf_w, clf_b = init_linear(keys[5], hidden, out_channels)

    return dict(
        hidden=hidden, h_pad=h_pad, in_pad=in_pad, out_pad=out_pad,
        out_channels=out_channels, max_depth=max_depth,
        enc_w=_pad2(enc_w, in_pad, h_pad).astype(jnp.bfloat16),
        enc_b=_pad2(enc_b[None, :], 1, h_pad),
        gin_weights=gin_weights,
        glob_out_w=_pad2(glob_w, h_pad, h_pad).astype(jnp.bfloat16),
        glob_out_b=_pad2(glob_b[None, :], 1, h_pad),
        loc_out_w=_pad2(loc_w, h_pad, h_pad).astype(jnp.bfloat16),
        loc_out_b=_pad2(loc_b[None, :], 1, h_pad),
        clf_w=_pad2(clf_w, h_pad, out_pad).astype(jnp.bfloat16),
        clf_b=_pad2(clf_b[None, :], 1, out_pad),
    )


# ---------------------------------------------------------------------------
# Forward pass (matches GNN_Net_Graph.forward, float-feature path, eval mode)
# ---------------------------------------------------------------------------
def gnn_net_graph_forward(params, x, edge_index, batch, num_graphs):
    # TODO(synk): int64 AtomEncoder (embedding-sum) input path not implemented;
    #             this covers the float-feature branch (self.encoder Linear).
    n = x.shape[0]
    n_pad = _round_up(max(n, SUBLANE), SUBLANE)
    h_real = params["hidden"]
    h_pad = params["h_pad"]
    in_pad = params["in_pad"]
    out_pad = params["out_pad"]
    out_ch = params["out_channels"]

    # --- host glue: lane-dense bf16 operands, no f32 materializations ---------
    x_p = jnp.zeros((n_pad, in_pad), jnp.bfloat16)
    x_p = x_p.at[:n, :x.shape[1]].set(x.astype(jnp.bfloat16))

    # (A + I) built directly in bf16; self-loops folded into the single scatter.
    # 0/1-ish integer entries are exact in bf16 up to 256.
    src, dst = edge_index[0], edge_index[1]
    loops = jnp.arange(n, dtype=edge_index.dtype)
    rows = jnp.concatenate([dst, loops])
    cols = jnp.concatenate([src, loops])
    m_hat = jnp.zeros((n_pad, n_pad), jnp.bfloat16)
    m_hat = m_hat.at[rows, cols].add(jnp.ones(rows.shape, jnp.bfloat16))

    # add-pool operator: (G, Np) bf16 membership mask (padding nodes -> no graph)
    batch_p = jnp.full((n_pad,), num_graphs, batch.dtype).at[:n].set(batch)
    pool = (jnp.arange(num_graphs, dtype=batch.dtype)[:, None]
            == batch_p[None, :]).astype(jnp.bfloat16)

    gin_w = params["gin_weights"]
    inputs = (x_p, m_hat, pool, params["enc_w"], params["enc_b"], *gin_w,
              params["loc_out_w"], params["loc_out_b"],
              params["glob_out_w"], params["glob_out_b"],
              params["clf_w"], params["clf_b"])

    # Explicit VMEM budget: inputs + a few live (Np, 2*Hp) activation copies,
    # clamped to the physical capacity of the current generation (64 MiB v7x).
    in_bytes = sum(int(a.size) * a.dtype.itemsize for a in inputs)
    act_bytes = n_pad * 2 * h_pad * 4 * 6
    try:
        vmem_cap = int(pltpu.get_tpu_info().vmem_capacity_bytes)
    except Exception:
        vmem_cap = 64 << 20
    vmem_limit = int(min(max(2 * (in_bytes + act_bytes), 32 << 20), vmem_cap))

    logits_pad, kld, diff = pl.pallas_call(
        functools.partial(_fused_forward_kernel,
                          num_layers=params["max_depth"],
                          h_real=h_real, h_pad=h_pad, n_real=n),
        out_shape=(jax.ShapeDtypeStruct((num_graphs, out_pad), jnp.float32),
                   jax.ShapeDtypeStruct((1, 1), jnp.float32),
                   jax.ShapeDtypeStruct((1, 1), jnp.float32)),
        in_specs=[VMEM] * len(inputs),
        out_specs=(VMEM, SMEM, SMEM),
        compiler_params=pltpu.CompilerParams(vmem_limit_bytes=vmem_limit),
    )(*inputs)

    logits = logits_pad[:, :out_ch]
    zero = jnp.zeros((1,), jnp.float32)
    return logits, kld[0, 0], zero, diff[0, 0], zero


# ---------------------------------------------------------------------------
if __name__ == "__main__":
    key = jax.random.PRNGKey(0)
    N, IN_CH, HIDDEN, OUT_CH, NUM_GRAPHS, E = 24, 16, 32, 8, 3, 40

    k_x, k_src, k_dst, k_batch, k_params = jax.random.split(key, 5)
    x = jax.random.normal(k_x, (N, IN_CH), jnp.float32)
    src = jax.random.randint(k_src, (E,), 0, N)
    dst = jax.random.randint(k_dst, (E,), 0, N)
    edge_index = jnp.stack([src, dst]).astype(jnp.int32)          # [2, E]
    batch = jnp.sort(
        jax.random.randint(k_batch, (N,), 0, NUM_GRAPHS)).astype(jnp.int32)

    params = init_params(k_params, IN_CH, HIDDEN, OUT_CH, max_depth=2)

    out = gnn_net_graph_forward(params, x, edge_index, batch, NUM_GRAPHS)
    out = jax.block_until_ready(out)

    logits, kld, z0, diff_lg, z1 = out
    assert logits.shape == (NUM_GRAPHS, OUT_CH)
    assert kld.shape == () and diff_lg.shape == ()
    assert z0.shape == (1,) and z1.shape == (1,)
    assert bool(jnp.all(jnp.isfinite(logits)))
    assert bool(jnp.isfinite(kld)) and bool(jnp.isfinite(diff_lg))
    print("KERNEL_OK")
</pallas_src>

<mosaic_0001>
module attributes {stable_mosaic.version = 11 : i64} {
  func.func @_fused_forward_kernel(%arg0: memref<24x128xbf16, #tpu.memory_space<vmem>>, %arg1: memref<24x24xbf16, #tpu.memory_space<vmem>>, %arg2: memref<3x24xbf16, #tpu.memory_space<vmem>>, %arg3: memref<128x128xbf16, #tpu.memory_space<vmem>>, %arg4: memref<1x128xf32, #tpu.memory_space<vmem>>, %arg5: memref<128x256xbf16, #tpu.memory_space<vmem>>, %arg6: memref<1x256xf32, #tpu.memory_space<vmem>>, %arg7: memref<256x256xbf16, #tpu.memory_space<vmem>>, %arg8: memref<1x256xf32, #tpu.memory_space<vmem>>, %arg9: memref<256x256xbf16, #tpu.memory_space<vmem>>, %arg10: memref<1x256xf32, #tpu.memory_space<vmem>>, %arg11: memref<256x256xbf16, #tpu.memory_space<vmem>>, %arg12: memref<1x256xf32, #tpu.memory_space<vmem>>, %arg13: memref<128x128xbf16, #tpu.memory_space<vmem>>, %arg14: memref<1x128xf32, #tpu.memory_space<vmem>>, %arg15: memref<128x128xbf16, #tpu.memory_space<vmem>>, %arg16: memref<1x128xf32, #tpu.memory_space<vmem>>, %arg17: memref<128x128xbf16, #tpu.memory_space<vmem>>, %arg18: memref<1x128xf32, #tpu.memory_space<vmem>>, %arg19: memref<3x128xf32, #tpu.memory_space<vmem>>, %arg20: memref<1x1xf32, #tpu.memory_space<smem>>, %arg21: memref<1x1xf32, #tpu.memory_space<smem>>) attributes {dimension_semantics = [], scalar_prefetch = 0 : i64, scratch_operands = 0 : i64, tpu.core_type = #tpu.core_type<tc>} {
    %c0 = arith.constant 0 : index
    %c0_0 = arith.constant 0 : index
    %0 = vector.load %arg0[%c0, %c0_0] : memref<24x128xbf16, #tpu.memory_space<vmem>>, vector<24x128xbf16>
    %c0_1 = arith.constant 0 : index
    %c0_2 = arith.constant 0 : index
    %1 = vector.load %arg3[%c0_1, %c0_2] : memref<128x128xbf16, #tpu.memory_space<vmem>>, vector<128x128xbf16>
    %cst = arith.constant dense<0.000000e+00> : vector<24x128xf32>
    %2 = tpu.matmul %0, %1, %cst {dimension_numbers = #tpu.dot_dimension_numbers<[1], [0], [0], [1], [0, 0, 1, 1], [], []>} : vector<24x128xbf16>, vector<128x128xbf16>, vector<24x128xf32> -> vector<24x128xf32>
    %c0_3 = arith.constant 0 : index
    %c0_4 = arith.constant 0 : index
    %3 = vector.load %arg4[%c0_3, %c0_4] : memref<1x128xf32, #tpu.memory_space<vmem>>, vector<1x128xf32>
    %4 = vector.broadcast %3 : vector<1x128xf32> to vector<24x128xf32>
    %5 = arith.addf %2, %4 : vector<24x128xf32>
    %6 = tpu.iota {dimensions = array<i32: 0>} : vector<24x128xi32>
    %c24_i32 = arith.constant 24 : i32
    %7 = vector.broadcast %c24_i32 : i32 to vector<24x128xi32>
    %8 = arith.cmpi slt, %6, %7 : vector<24x128xi32>
    %9 = arith.extui %8 : vector<24x128xi1> to vector<24x128xi32>
    %10 = arith.sitofp %9 : vector<24x128xi32> to vector<24x128xf32>
    %11 = arith.mulf %5, %10 : vector<24x128xf32>
    %cst_5 = arith.constant dense<0.000000e+00> : vector<128xf32>
    %12 = vector.multi_reduction <add>, %11, %cst_5 [0] : vector<24x128xf32> to vector<128xf32>
    %13 = vector.shape_cast %12 : vector<128xf32> to vector<1x128xf32>
    %cst_6 = arith.constant 2.400000e+01 : f32
    %14 = vector.broadcast %cst_6 : f32 to vector<1x128xf32>
    %15 = arith.divf %13, %14 : vector<1x128xf32>
    %16 = vector.broadcast %15 : vector<1x128xf32> to vector<24x128xf32>
    %17 = arith.subf %5, %16 : vector<24x128xf32>
    %18 = arith.mulf %17, %10 : vector<24x128xf32>
    %19 = arith.mulf %18, %18 : vector<24x128xf32>
    %cst_7 = arith.constant dense<0.000000e+00> : vector<128xf32>
    %20 = vector.multi_reduction <add>, %19, %cst_7 [0] : vector<24x128xf32> to vector<128xf32>
    %21 = vector.shape_cast %20 : vector<128xf32> to vector<1x128xf32>
    %cst_8 = arith.constant 2.300000e+01 : f32
    %22 = vector.broadcast %cst_8 : f32 to vector<1x128xf32>
    %23 = arith.divf %21, %22 : vector<1x128xf32>
    %cst_9 = arith.constant 9.99999996E-13 : f32
    %24 = vector.broadcast %cst_9 : f32 to vector<1x128xf32>
    %25 = arith.addf %23, %24 : vector<1x128xf32>
    %26 = math.log %25 : vector<1x128xf32>
    %cst_10 = arith.constant 1.000000e+00 : f32
    %27 = vector.broadcast %cst_10 : f32 to vector<1x128xf32>
    %28 = arith.addf %27, %26 : vector<1x128xf32>
    %29 = arith.mulf %15, %15 : vector<1x128xf32>
    %30 = arith.subf %28, %29 : vector<1x128xf32>
    %31 = arith.subf %30, %23 : vector<1x128xf32>
    %32 = tpu.iota {dimensions = array<i32: 1>} : vector<1x128xi32>
    %c32_i32 = arith.constant 32 : i32
    %33 = vector.broadcast %c32_i32 : i32 to vector<1x128xi32>
    %34 = arith.cmpi slt, %32, %33 : vector<1x128xi32>
    %cst_11 = arith.constant 0.000000e+00 : f32
    %35 = vector.broadcast %cst_11 : f32 to vector<1x128xf32>
    %36 = arith.select %34, %31, %35 : vector<1x128xi1>, vector<1x128xf32>
    %37 = vector.shape_cast %36 : vector<1x128xf32> to vector<1x1x128xf32>
    %cst_12 = arith.constant dense<0.000000e+00> : vector<1xf32>
    %38 = vector.multi_reduction <add>, %37, %cst_12 [1, 2] : vector<1x1x128xf32> to vector<1xf32>
    %39 = vector.shape_cast %38 : vector<1xf32> to vector<1x1x1xf32>
    %40 = vector.extract %39[0, 0, 0] : f32 from vector<1x1x1xf32>
    %cst_13 = arith.constant -5.000000e-01 : f32
    %41 = arith.mulf %cst_13, %40 : f32
    %cst_14 = arith.constant 3.200000e+01 : f32
    %42 = arith.divf %41, %cst_14 : f32
    %c0_15 = arith.constant 0 : index
    %c0_16 = arith.constant 0 : index
    %43 = memref.load %arg20[%c0_15, %c0_16] : memref<1x1xf32, #tpu.memory_space<smem>>
    memref.store %42, %arg20[%c0_15, %c0_16] : memref<1x1xf32, #tpu.memory_space<smem>>
    %c0_17 = arith.constant 0 : index
    %c0_18 = arith.constant 0 : index
    %44 = vector.load %arg1[%c0_17, %c0_18] : memref<24x24xbf16, #tpu.memory_space<vmem>>, vector<24x24xbf16>
    %45 = arith.truncf %5 : vector<24x128xf32> to vector<24x128xbf16>
    %cst_19 = arith.constant dense<0.000000e+00> : vector<24x128xf32>
    %46 = tpu.matmul %44, %45, %cst_19 {dimension_numbers = #tpu.dot_dimension_numbers<[1], [0], [0], [1], [0, 0, 1, 1], [], []>} : vector<24x24xbf16>, vector<24x128xbf16>, vector<24x128xf32> -> vector<24x128xf32>
    %47 = arith.truncf %46 : vector<24x128xf32> to vector<24x128xbf16>
    %c0_20 = arith.constant 0 : index
    %c0_21 = arith.constant 0 : index
    %48 = vector.load %arg5[%c0_20, %c0_21] : memref<128x256xbf16, #tpu.memory_space<vmem>>, vector<128x256xbf16>
    %cst_22 = arith.constant dense<0.000000e+00> : vector<24x256xf32>
    %49 = tpu.matmul %47, %48, %cst_22 {dimension_numbers = #tpu.dot_dimension_numbers<[1], [0], [0], [1], [0, 0, 1, 1], [], []>} : vector<24x128xbf16>, vector<128x256xbf16>, vector<24x256xf32> -> vector<24x256xf32>
    %c0_23 = arith.constant 0 : index
    %c0_24 = arith.constant 0 : index
    %50 = vector.load %arg6[%c0_23, %c0_24] : memref<1x256xf32, #tpu.memory_space<vmem>>, vector<1x256xf32>
    %51 = vector.broadcast %50 : vector<1x256xf32> to vector<24x256xf32>
    %52 = arith.addf %49, %51 : vector<24x256xf32>
    %cst_25 = arith.constant 0.000000e+00 : f32
    %53 = vector.broadcast %cst_25 : f32 to vector<24x256xf32>
    %54 = arith.maximumf %52, %53 : vector<24x256xf32>
    %55 = arith.truncf %54 : vector<24x256xf32> to vector<24x256xbf16>
    %c0_26 = arith.constant 0 : index
    %c0_27 = arith.constant 0 : index
    %56 = vector.load %arg7[%c0_26, %c0_27] : memref<256x256xbf16, #tpu.memory_space<vmem>>, vector<256x256xbf16>
    %cst_28 = arith.constant dense<0.000000e+00> : vector<24x256xf32>
    %57 = tpu.matmul %55, %56, %cst_28 {dimension_numbers = #tpu.dot_dimension_numbers<[1], [0], [0], [1], [0, 0, 1, 1], [], []>} : vector<24x256xbf16>, vector<256x256xbf16>, vector<24x256xf32> -> vector<24x256xf32>
    %c0_29 = arith.constant 0 : index
    %c0_30 = arith.constant 0 : index
    %58 = vector.load %arg8[%c0_29, %c0_30] : memref<1x256xf32, #tpu.memory_space<vmem>>, vector<1x256xf32>
    %59 = vector.broadcast %58 : vector<1x256xf32> to vector<24x256xf32>
    %60 = arith.addf %57, %59 : vector<24x256xf32>
    %cst_31 = arith.constant 0.000000e+00 : f32
    %61 = vector.broadcast %cst_31 : f32 to vector<24x256xf32>
    %62 = arith.maximumf %60, %61 : vector<24x256xf32>
    %63 = arith.truncf %62 : vector<24x256xf32> to vector<24x256xbf16>
    %cst_32 = arith.constant dense<0.000000e+00> : vector<24x256xf32>
    %64 = tpu.matmul %44, %63, %cst_32 {dimension_numbers = #tpu.dot_dimension_numbers<[1], [0], [0], [1], [0, 0, 1, 1], [], []>} : vector<24x24xbf16>, vector<24x256xbf16>, vector<24x256xf32> -> vector<24x256xf32>
    %65 = arith.truncf %64 : vector<24x256xf32> to vector<24x256xbf16>
    %c0_33 = arith.constant 0 : index
    %c0_34 = arith.constant 0 : index
    %66 = vector.load %arg9[%c0_33, %c0_34] : memref<256x256xbf16, #tpu.memory_space<vmem>>, vector<256x256xbf16>
    %cst_35 = arith.constant dense<0.000000e+00> : vector<24x256xf32>
    %67 = tpu.matmul %65, %66, %cst_35 {dimension_numbers = #tpu.dot_dimension_numbers<[1], [0], [0], [1], [0, 0, 1, 1], [], []>} : vector<24x256xbf16>, vector<256x256xbf16>, vector<24x256xf32> -> vector<24x256xf32>
    %c0_36 = arith.constant 0 : index
    %c0_37 = arith.constant 0 : index
    %68 = vector.load %arg10[%c0_36, %c0_37] : memref<1x256xf32, #tpu.memory_space<vmem>>, vector<1x256xf32>
    %69 = vector.broadcast %68 : vector<1x256xf32> to vector<24x256xf32>
    %70 = arith.addf %67, %69 : vector<24x256xf32>
    %cst_38 = arith.constant 0.000000e+00 : f32
    %71 = vector.broadcast %cst_38 : f32 to vector<24x256xf32>
    %72 = arith.maximumf %70, %71 : vector<24x256xf32>
    %73 = arith.truncf %72 : vector<24x256xf32> to vector<24x256xbf16>
    %c0_39 = arith.constant 0 : index
    %c0_40 = arith.constant 0 : index
    %74 = vector.load %arg11[%c0_39, %c0_40] : memref<256x256xbf16, #tpu.memory_space<vmem>>, vector<256x256xbf16>
    %cst_41 = arith.constant dense<0.000000e+00> : vector<24x256xf32>
    %75 = tpu.matmul %73, %74, %cst_41 {dimension_numbers = #tpu.dot_dimension_numbers<[1], [0], [0], [1], [0, 0, 1, 1], [], []>} : vector<24x256xbf16>, vector<256x256xbf16>, vector<24x256xf32> -> vector<24x256xf32>
    %c0_42 = arith.constant 0 : index
    %c0_43 = arith.constant 0 : index
    %76 = vector.load %arg12[%c0_42, %c0_43] : memref<1x256xf32, #tpu.memory_space<vmem>>, vector<1x256xf32>
    %77 = vector.broadcast %76 : vector<1x256xf32> to vector<24x256xf32>
    %78 = arith.addf %75, %77 : vector<24x256xf32>
    %79 = arith.truncf %78 : vector<24x256xf32> to vector<24x256xbf16>
    %c0_44 = arith.constant 0 : index
    %c0_45 = arith.constant 0 : index
    %80 = vector.load %arg2[%c0_44, %c0_45] : memref<3x24xbf16, #tpu.memory_space<vmem>>, vector<3x24xbf16>
    %cst_46 = arith.constant dense<0.000000e+00> : vector<3x256xf32>
    %81 = tpu.matmul %80, %79, %cst_46 {dimension_numbers = #tpu.dot_dimension_numbers<[1], [0], [0], [1], [0, 0, 1, 1], [], []>} : vector<3x24xbf16>, vector<24x256xbf16>, vector<3x256xf32> -> vector<3x256xf32>
    %82 = vector.extract_strided_slice %81 {offsets = [0, 0], sizes = [3, 128], strides = [1, 1]} : vector<3x256xf32> to vector<3x128xf32>
    %83 = vector.extract_strided_slice %81 {offsets = [0, 128], sizes = [3, 128], strides = [1, 1]} : vector<3x256xf32> to vector<3x128xf32>
    %84 = arith.truncf %82 : vector<3x128xf32> to vector<3x128xbf16>
    %c0_47 = arith.constant 0 : index
    %c0_48 = arith.constant 0 : index
    %85 = vector.load %arg13[%c0_47, %c0_48] : memref<128x128xbf16, #tpu.memory_space<vmem>>, vector<128x128xbf16>
    %cst_49 = arith.constant dense<0.000000e+00> : vector<3x128xf32>
    %86 = tpu.matmul %84, %85, %cst_49 {dimension_numbers = #tpu.dot_dimension_numbers<[1], [0], [0], [1], [0, 0, 1, 1], [], []>} : vector<3x128xbf16>, vector<128x128xbf16>, vector<3x128xf32> -> vector<3x128xf32>
    %c0_50 = arith.constant 0 : index
    %c0_51 = arith.constant 0 : index
    %87 = vector.load %arg14[%c0_50, %c0_51] : memref<1x128xf32, #tpu.memory_space<vmem>>, vector<1x128xf32>
    %88 = vector.broadcast %87 : vector<1x128xf32> to vector<3x128xf32>
    %89 = arith.addf %86, %88 : vector<3x128xf32>
    %cst_52 = arith.constant 0.000000e+00 : f32
    %90 = vector.broadcast %cst_52 : f32 to vector<3x128xf32>
    %91 = arith.maximumf %89, %90 : vector<3x128xf32>
    %92 = arith.truncf %83 : vector<3x128xf32> to vector<3x128xbf16>
    %c0_53 = arith.constant 0 : index
    %c0_54 = arith.constant 0 : index
    %93 = vector.load %arg15[%c0_53, %c0_54] : memref<128x128xbf16, #tpu.memory_space<vmem>>, vector<128x128xbf16>
    %cst_55 = arith.constant dense<0.000000e+00> : vector<3x128xf32>
    %94 = tpu.matmul %92, %93, %cst_55 {dimension_numbers = #tpu.dot_dimension_numbers<[1], [0], [0], [1], [0, 0, 1, 1], [], []>} : vector<3x128xbf16>, vector<128x128xbf16>, vector<3x128xf32> -> vector<3x128xf32>
    %c0_56 = arith.constant 0 : index
    %c0_57 = arith.constant 0 : index
    %95 = vector.load %arg16[%c0_56, %c0_57] : memref<1x128xf32, #tpu.memory_space<vmem>>, vector<1x128xf32>
    %96 = vector.broadcast %95 : vector<1x128xf32> to vector<3x128xf32>
    %97 = arith.addf %94, %96 : vector<3x128xf32>
    %cst_58 = arith.constant 0.000000e+00 : f32
    %98 = vector.broadcast %cst_58 : f32 to vector<3x128xf32>
    %99 = arith.maximumf %97, %98 : vector<3x128xf32>
    %100 = arith.mulf %82, %82 : vector<3x128xf32>
    %cst_59 = arith.constant dense<0.000000e+00> : vector<3xf32>
    %101 = vector.multi_reduction <add>, %100, %cst_59 [1] : vector<3x128xf32> to vector<3xf32>
    %102 = vector.shape_cast %101 : vector<3xf32> to vector<3x1xf32>
    %103 = math.sqrt %102 : vector<3x1xf32>
    %104 = arith.mulf %83, %83 : vector<3x128xf32>
    %cst_60 = arith.constant dense<0.000000e+00> : vector<3xf32>
    %105 = vector.multi_reduction <add>, %104, %cst_60 [1] : vector<3x128xf32> to vector<3xf32>
    %106 = vector.shape_cast %105 : vector<3xf32> to vector<3x1xf32>
    %107 = math.sqrt %106 : vector<3x1xf32>
    %cst_61 = arith.constant 9.99999997E-7 : f32
    %108 = vector.broadcast %cst_61 : f32 to vector<3x1xf32>
    %109 = arith.addf %103, %108 : vector<3x1xf32>
    %110 = vector.broadcast %109 : vector<3x1xf32> to vector<3x128xf32>
    %111 = arith.divf %82, %110 : vector<3x128xf32>
    %cst_62 = arith.constant 9.99999997E-7 : f32
    %112 = vector.broadcast %cst_62 : f32 to vector<3x1xf32>
    %113 = arith.addf %107, %112 : vector<3x1xf32>
    %114 = vector.broadcast %113 : vector<3x1xf32> to vector<3x128xf32>
    %115 = arith.divf %83, %114 : vector<3x128xf32>
    %cst_63 = arith.constant dense<0.000000e+00> : vector<128x128xf32>
    %116 = tpu.matmul %111, %115, %cst_63 {dimension_numbers = #tpu.dot_dimension_numbers<[0], [0], [1], [1], [0, 1, 1, 1], [], []>} : vector<3x128xf32>, vector<3x128xf32>, vector<128x128xf32> -> vector<128x128xf32>
    %117 = arith.mulf %116, %116 : vector<128x128xf32>
    %118 = vector.shape_cast %117 : vector<128x128xf32> to vector<1x128x128xf32>
    %cst_64 = arith.constant dense<0.000000e+00> : vector<1xf32>
    %119 = vector.multi_reduction <add>, %118, %cst_64 [1, 2] : vector<1x128x128xf32> to vector<1xf32>
    %120 = vector.shape_cast %119 : vector<1xf32> to vector<1x1x1xf32>
    %121 = vector.extract %120[0, 0, 0] : f32 from vector<1x1x1xf32>
    %cst_65 = arith.constant 1.024000e+03 : f32
    %122 = arith.divf %121, %cst_65 : f32
    %c0_66 = arith.constant 0 : index
    %c0_67 = arith.constant 0 : index
    %123 = memref.load %arg21[%c0_66, %c0_67] : memref<1x1xf32, #tpu.memory_space<smem>>
    memref.store %122, %arg21[%c0_66, %c0_67] : memref<1x1xf32, #tpu.memory_space<smem>>
    %124 = arith.addf %91, %99 : vector<3x128xf32>
    %125 = arith.truncf %124 : vector<3x128xf32> to vector<3x128xbf16>
    %c0_68 = arith.constant 0 : index
    %c0_69 = arith.constant 0 : index
    %126 = vector.load %arg17[%c0_68, %c0_69] : memref<128x128xbf16, #tpu.memory_space<vmem>>, vector<128x128xbf16>
    %cst_70 = arith.constant dense<0.000000e+00> : vector<3x128xf32>
    %127 = tpu.matmul %125, %126, %cst_70 {dimension_numbers = #tpu.dot_dimension_numbers<[1], [0], [0], [1], [0, 0, 1, 1], [], []>} : vector<3x128xbf16>, vector<128x128xbf16>, vector<3x128xf32> -> vector<3x128xf32>
    %c0_71 = arith.constant 0 : index
    %c0_72 = arith.constant 0 : index
    %128 = vector.load %arg18[%c0_71, %c0_72] : memref<1x128xf32, #tpu.memory_space<vmem>>, vector<1x128xf32>
    %129 = vector.broadcast %128 : vector<1x128xf32> to vector<3x128xf32>
    %130 = arith.addf %127, %129 : vector<3x128xf32>
    %c0_73 = arith.constant 0 : index
    %c0_74 = arith.constant 0 : index
    %131 = vector.load %arg19[%c0_73, %c0_74] : memref<3x128xf32, #tpu.memory_space<vmem>>, vector<3x128xf32>
    tpu.vector_store %arg19[%c0_73, %c0_74], %130 {strides = array<i32>} : memref<3x128xf32, #tpu.memory_space<vmem>>, vector<3x128xf32>,
    return
  }
}

</mosaic_0001>

<bundles_post_ra>
// kernel: tpu_custom_call.1
= control target key start
LH: loop header
LB: loop body
LE: loop exit
PB: predicated region body
PF: predicated region fallthrough
CT: control target
= control target key end

     0   :  { %s3597_s0 = inlined_call_operand.hbm [shape: bf16[24,128], index: 0, kind: input, shape index: {}]   ;;  %s3598_s1 = inlined_call_operand.hbm [shape: bf16[24,24], index: 1, kind: input, shape index: {}]   ;;  %s3599_s2 = inlined_call_operand.hbm [shape: bf16[3,24], index: 2, kind: input, shape index: {}]   ;;  %s3600_s3 = inlined_call_operand.hbm [shape: bf16[128,128], index: 3, kind: input, shape index: {}]   ;;  %s3601_s4 = inlined_call_operand.hbm [shape: f32[1,128], index: 4, kind: input, shape index: {}]   ;;  %s3602_s5 = inlined_call_operand.hbm [shape: bf16[128,256], index: 5, kind: input, shape index: {}]   ;;  %s3603_s6 = inlined_call_operand.vmem [shape: f32[1,256], index: 6, kind: input, shape index: {}]   ;;  %s3604_s7 = inlined_call_operand.hbm [shape: bf16[256,256], index: 7, kind: input, shape index: {}]   ;;  %s3605_s8 = inlined_call_operand.vmem [shape: f32[1,256], index: 8, kind: input, shape index: {}]   ;;  %s3606_s9 = inlined_call_operand.hbm [shape: bf16[256,256], index: 9, kind: input, shape index: {}]   ;;  %s3607_s10 = inlined_call_operand.vmem [shape: f32[1,256], index: 10, kind: input, shape index: {}]   ;;  %s3608_s11 = inlined_call_operand.hbm [shape: bf16[256,256], index: 11, kind: input, shape index: {}]   ;;  %s3609_s12 = inlined_call_operand.vmem [shape: f32[1,256], index: 12, kind: input, shape index: {}]   ;;  %s3610_s13 = inlined_call_operand.hbm [shape: bf16[128,128], index: 13, kind: input, shape index: {}]   ;;  %s3611_s14 = inlined_call_operand.vmem [shape: f32[1,128], index: 14, kind: input, shape index: {}]   ;;  %s3612_s15 = inlined_call_operand.hbm [shape: bf16[128,128], index: 15, kind: input, shape index: {}]   ;;  %s3613_s16 = inlined_call_operand.vmem [shape: f32[1,128], index: 16, kind: input, shape index: {}]   ;;  %s3614_s17 = inlined_call_operand.hbm [shape: bf16[128,128], index: 17, kind: input, shape index: {}]   ;;  %s3615_s18 = inlined_call_operand.vmem [shape: f32[1,128], index: 18, kind: input, shape index: {}]   ;;  %s3616_s19 = inlined_call_operand.hbm [shape: f32[3,128], index: 19, kind: output, shape index: {0}]   ;;  %s3617_s20 = inlined_call_operand.hbm [shape: f32[1,1], index: 20, kind: output, shape index: {1}]   ;;  %s3618_s21 = inlined_call_operand.hbm [shape: f32[1,1], index: 21, kind: output, shape index: {2}]  }
   0x1   :  { %3621 = sst [smem:[#allocation37_spill]] %s3597_s0 }
   0x2   :  { %3622 = sst [smem:[#allocation38_spill]] %s3598_s1 }
   0x3   :  { %3623 = sst [smem:[#allocation39_spill]] %s3599_s2 }
   0x4   :  { %3624 = sst [smem:[#allocation40_spill]] %s3600_s3 }
   0x5   :  { %3625 = sst [smem:[#allocation41_spill]] %s3601_s4 }
   0x6   :  { %3626 = sst [smem:[#allocation42_spill]] %s3602_s5 }
   0x7   :  { %3627 = sst [smem:[#allocation43_spill]] %s3617_s20 }
   0x8   :  { %3628 = sst [smem:[#allocation44_spill]] %s3618_s21 }
   0x9   :  { %27 = vsyncpa [#allocation3], 0 }
   0xa   :  { %28 = vsyncpa [#allocation7], 0 }
   0xb   :  { %29 = vsyncpa [#allocation10], 0 }
   0xc   :  { %30 = vsyncpa [#allocation13], 0 }
   0xd   :  { %31 = vsyncpa [#allocation16], 0 }
   0xe   :  { %32 = vsyncpa [#allocation19], 0 }
   0xf   :  { %33 = vsyncpa [#allocation22], 0 }
  0x10   :  { %34 = vsyncpa [#allocation4], 0 }
  0x11   :  { %35 = vsyncpa [#allocation5], 0 }
  0x12   :  { %36 = vsyncpa [#allocation26], 0  ;;  %s3629_s26 = sld [smem:[#allocation38_spill]]  ;;  %s3285_s3 = smov [#allocation6]  }
  0x13   :  { %s56_s28 = sshll.u32 %s3285_s3, 4  ;;  %s3630_s4 = sld [smem:[#allocation40_spill]]  ;;  %s57_s28 = int_to_ptr.vmem [resolvable:$true] %s56_s28 }
  0x14   :  { %s3619_s5 = smov 64   ;;  %s3287_s22 = smov 4  }
  0x15   :  { %s3288_s23 = smov [#allocation9]   ;;  %s3631_s25 = sld [smem:[#allocation42_spill]] }
  0x16   :  { %s80_s1 = sshll.u32 %s3288_s23, 4  ;;  %s3289_s3 = smov [#allocation12]   ;;  %s81_s1 = int_to_ptr.vmem [resolvable:$true] %s80_s1 }
  0x17   :  { %s104_s29 = sshll.u32 %s3289_s3, 4  ;;  %s3291_s21 = smov 8   ;;  %s105_s29 = int_to_ptr.vmem [resolvable:$true] %s104_s29 }
  0x18   :  { %s54_s27 = sshll.u32 %s3629_s26, 4  ;;  %s3292_s23 = smov [#allocation15]   ;;  %s55_s27 = int_to_ptr.hbm [resolvable:$true] %s54_s27 }
  0x19   :  { %s78_s30 = sshll.u32 %s3630_s4, 4  ;;  %s134_s24 = sshll.u32 %s3292_s23, 4  ;;  %s79_s30 = int_to_ptr.hbm [resolvable:$true] %s78_s30  ;;  %s135_s24 = int_to_ptr.vmem [resolvable:$true] %s134_s24 }
  0x1a   :  { %62 = dma.hbm_to_vmem [thread:$0]  %s55_s27, 192, %s57_s28, [#allocation7], %s3619_s5, %s3619_s5, %s3287_s22  }
  0x1b   :  { %s102_s26 = sshll.u32 %s3631_s25, 4  ;;  %s132_s27 = sshll.u32 %s3606_s9, 4  ;;  %s103_s26 = int_to_ptr.hbm [resolvable:$true] %s102_s26  ;;  %s133_s27 = int_to_ptr.hbm [resolvable:$true] %s132_s27 }
  0x1c   :  { %86 = dma.hbm_to_vmem [thread:$0]  %s79_s30, 1024, %s81_s1, [#allocation10], %s3619_s5, %s3619_s5, %s3287_s22  }
  0x1d   :  { %s3290_s28 = smov 128   ;;  %s162_s30 = sshll.u32 %s3610_s13, 4  ;;  %s163_s30 = int_to_ptr.hbm [resolvable:$true] %s162_s30 }
  0x1e   :  { %110 = dma.hbm_to_vmem [thread:$0]  %s103_s26, 2048, %s105_s29, [#allocation13], %s3290_s28, %s3290_s28, %s3291_s21  }
  0x1f   :  { %140 = dma.hbm_to_vmem [thread:$0]  %s133_s27, 4096, %s135_s24, [#allocation16], %s3290_s28, %s3290_s28, %s3291_s21  }
  0x20   :  { %s3632_s3 = sld [smem:[#allocation37_spill]]  ;;  %s3293_s4 = smov [#allocation18]  }
  0x21   :  { %s164_s5 = sshll.u32 %s3293_s4, 4  ;;  %s3633_s26 = smov 64   ;;  %s165_s5 = int_to_ptr.vmem [resolvable:$true] %s164_s5 }
  0x22   :  { %170 = dma.hbm_to_vmem [thread:$0]  %s163_s30, 1024, %s165_s5, [#allocation19], %s3633_s26, %s3633_s26, %s3287_s22  }
  0x23   :  { %s3294_s29 = smov [#allocation2]   ;;  %s3634_s25 = sld [smem:[#allocation39_spill]] }
  0x24   :  { %s43_s13 = sshll.u32 %s3294_s29, 4  ;;  %s3635_s9 = sld [smem:[#allocation41_spill]]  ;;  %s44_s13 = int_to_ptr.vmem [resolvable:$true] %s43_s13 }
  0x25   :  { %s3296_s5 = smov [#allocation11]   ;;  %s117_s2 = sshll.u32 %s3604_s7, 4  ;;  %s118_s2 = int_to_ptr.hbm [resolvable:$true] %s117_s2 }
  0x26   :  { %s41_s0 = sshll.u32 %s3632_s3, 4  ;;  %s3295_s3 = smov [#allocation8]   ;;  %s42_s0 = int_to_ptr.hbm [resolvable:$true] %s41_s0 }
  0x27   :  { %49 = dma.hbm_to_vmem [thread:$0]  %s42_s0, 192, %s44_s13, [#allocation3], %s3633_s26, %s3633_s26, %s3287_s22  }
  0x28   :  { %s70_s4 = sshll.u32 %s3295_s3, 4  ;;  %s94_s30 = sshll.u32 %s3296_s5, 4  ;;  %s71_s4 = int_to_ptr.vmem [resolvable:$true] %s70_s4  ;;  %s95_s30 = int_to_ptr.vmem [resolvable:$true] %s94_s30 }
  0x29   :  { %s68_s20 = sshll.u32 %s3634_s25, 4  ;;  %s147_s13 = sshll.u32 %s3608_s11, 4  ;;  %s69_s20 = int_to_ptr.hbm [resolvable:$true] %s68_s20  ;;  %s148_s13 = int_to_ptr.hbm [resolvable:$true] %s147_s13 }
  0x2a   :  { %s92_s1 = sshll.u32 %s3635_s9, 4  ;;  %s3297_s27 = smov [#allocation14]   ;;  %s93_s1 = int_to_ptr.hbm [resolvable:$true] %s92_s1 }
  0x2b   :  { %73 = dma.hbm_to_vmem [thread:$0]  %s69_s20, 32, %s71_s4, [#allocation7]  }
  0x2c   :  { %97 = dma.hbm_to_vmem [thread:$0]  %s93_s1, 16, %s95_s30, [#allocation10]  }
  0x2d   :  { %s119_s24 = sshll.u32 %s3297_s27, 4  ;;  %s3298_s20 = smov [#allocation17]   ;;  %s120_s24 = int_to_ptr.vmem [resolvable:$true] %s119_s24 }
  0x2e   :  { %125 = dma.hbm_to_vmem [thread:$0]  %s118_s2, 4096, %s120_s24, [#allocation13], %s3290_s28, %s3290_s28, %s3291_s21  }
  0x2f   :  { %s149_s9 = sshll.u32 %s3298_s20, 4  ;;  %s177_s7 = sshll.u32 %s3612_s15, 4  ;;  %s150_s9 = int_to_ptr.vmem [resolvable:$true] %s149_s9  ;;  %s178_s7 = int_to_ptr.hbm [resolvable:$true] %s177_s7 }
  0x30   :  { %155 = dma.hbm_to_vmem [thread:$0]  %s148_s13, 4096, %s150_s9, [#allocation16], %s3290_s28, %s3290_s28, %s3291_s21  }
  0x31   :  { %s192_s5 = sshll.u32 %s3614_s17, 4  ;;  %s3299_s30 = smov [#allocation20]   ;;  %s193_s5 = int_to_ptr.hbm [resolvable:$true] %s192_s5 }
  0x32   :  { %s179_s29 = sshll.u32 %s3299_s30, 4  ;;  %s3300_s23 = smov [#allocation21]   ;;  %s180_s29 = int_to_ptr.vmem [resolvable:$true] %s179_s29 }
  0x33   :  { %185 = dma.hbm_to_vmem [thread:$0]  %s178_s7, 1024, %s180_s29, [#allocation19], %s3633_s26, %s3633_s26, %s3287_s22  }
  0x34   :  { %s194_s15 = sshll.u32 %s3300_s23, 4  ;;  %s195_s15 = int_to_ptr.vmem [resolvable:$true] %s194_s15 }
  0x35   :  { %200 = dma.hbm_to_vmem [thread:$0]  %s193_s5, 1024, %s195_s15, [#allocation22], %s3633_s26, %s3633_s26, %s3287_s22  }
  0x36   :  { %3265 = dma.done.wait [#allocation3], 192  }
  0x37   :  { %3266 = vsyncadd [#allocation3], 4294967104 }
  0x38   :  { %3267 = dma.done.wait [#allocation7], 224  }
  0x39   :  { %3268 = vsyncadd [#allocation7], 4294967072 }
  0x3a   :  { %3269 = dma.done.wait [#allocation10], 1040  }
  0x3b   :  { %3270 = vsyncadd [#allocation10], 4294966256 }
  0x3c   :  { %3271 = dma.done.wait [#allocation13], 6144  }
  0x3d   :  { %3272 = vsyncadd [#allocation13], 4294961152 }
  0x3e   :  { %3273 = dma.done.wait [#allocation16], 8192  }
  0x3f   :  { %3274 = vsyncadd [#allocation16], 4294959104 }
  0x40   :  { %3275 = dma.done.wait [#allocation19], 2048  }
  0x41   :  { %3276 = vsyncadd [#allocation19], 4294965248 }
  0x42   :  { %3277 = dma.done.wait [#allocation22], 1024  }
  0x43   :  { %3278 = vsyncadd [#allocation22], 4294966272  ;;  %v2734_v0 = vld [vmem:[#allocation9 + $0x38] sm:$0xff]  ;;  %v2733_v1 = vld [vmem:[#allocation9 + $0x30] sm:$0xff]  ;;  %v3301_v13 = vmov 24.0   ;;  %vm462_vm0 = vcmask 1043456  }
  0x44   :  { %333 = vmatpush.bf16.msra.mxu0 %v2734_v0  ;;  %v2732_v2 = vld [vmem:[#allocation9 + $0x28] sm:$0xff]  ;;  %v2731_v3 = vld [vmem:[#allocation9 + $0x20] sm:$0xff]  ;;  %v2730_v4 = vld [vmem:[#allocation9 + $0x18] sm:$0xff]  ;;  %2911 = vrcp.f32 %v3301_v13  ;;  %vm455_vm1 = vcmask 195584   ;;  %v3302_v0 = vmov 23.0   ;;  %vm1717_vm4 = vcmask 1042432  }
  0x45   :  { %v2729_v5 = vld [vmem:[#allocation9 + $0x10] sm:$0xff]  ;;  %v2728_v6 = vld [vmem:[#allocation9 + $0x8] sm:$0xff]  ;;  %v2727_v7 = vld [vmem:[#allocation9] sm:$0xff]  ;;  %2913 = vrcp.f32 %v3302_v0  ;;  %s3304_s9 = smov [#allocation23]   ;;  %s2072_s11 = sshll.u32 %s3616_s19, 4  ;;  %s2073_s11 = int_to_ptr.hbm [resolvable:$true] %s2072_s11 }
  0x46   :  { %v2726_v8 = vld [vmem:[#allocation2] sm:$0xff]  ;;  %v254_v9 = vld [vmem:[#allocation2 + $0x8] sm:$0xf]  ;;  %v2907_v14 = vld [vmem:[#allocation11] ss:$0 sm:$0xff]  ;;  %s2070_s3 = sshll.u32 %s3304_s9, 4  ;;  %s2071_s3 = int_to_ptr.vmem [resolvable:$true] %s2070_s3 }
  0x47   :  { %v280_v10 = vunpack.c.l.b16 %v254_v9  ;;  %v2217_v21 = vld [vmem:[#allocation12 + $0x70] sm:$0xf]  ;;  %v2751_v22 = vld [vmem:[#allocation12 + $0x74] sm:$0xf0]  ;;  %v2750_v24 = vld [vmem:[#allocation12 + $0x74] sm:$0xf] }
  0x48   :  { %334 = vmatpush.bf16.msra.mxu0 %v2733_v1  ;;  %v2218_v23 = vor.u32 %v2751_v22, %v2217_v21  ;;  %v2219_v25 = vld [vmem:[#allocation12 + $0x78] sm:$0xf0]  ;;  %v2209_v26 = vld [vmem:[#allocation12 + $0x60] sm:$0xf]  ;;  %v2749_v28 = vld [vmem:[#allocation12 + $0x64] sm:$0xf0] }
  0x49   :  { %v282_v11 = vpack.c.b16 %v280_v10, %v280_v10  ;;  %v2222_v27 = vor.u32 %v2750_v24, %v2219_v25  ;;  %v2748_v29 = vld [vmem:[#allocation12 + $0x64] sm:$0xf]  ;;  %v2211_v30 = vld [vmem:[#allocation12 + $0x68] sm:$0xf0]  ;;  %v2210_v32 = vor.u32 %v2749_v28, %v2209_v26  ;;  %v2201_v35 = vld [vmem:[#allocation12 + $0x50] sm:$0xf] }
  0x4a   :  { %v3488_v18 = vpop.eup %2911  ;;  %588 = vmatpush.bf16.msra.mxu2 %v2218_v23  ;;  %v2214_v34 = vor.u32 %v2748_v29, %v2211_v30  ;;  %v2747_v36 = vld [vmem:[#allocation12 + $0x54] sm:$0xf0]  ;;  %v2746_v38 = vld [vmem:[#allocation12 + $0x54] sm:$0xf]  ;;  %v2203_v39 = vld [vmem:[#allocation12 + $0x58] sm:$0xf0] }
  0x4b   :  { %v376_v20 = vmul.f32 24.0, %v3488_v18  ;;  %606 = vmatpush.bf16.msra.mxu3 %v2222_v27  ;;  %v2202_v42 = vor.u32 %v2747_v36, %v2201_v35  ;;  %v2206_v45 = vor.u32 %v2746_v38, %v2203_v39  ;;  %v2193_v46 = vld [vmem:[#allocation12 + $0x40] sm:$0xf]  ;;  %v2745_v47 = vld [vmem:[#allocation12 + $0x44] sm:$0xf0]  ;;  %v3497_v56 = vld [vmem:[#allocation6] sm:$0xff]  ;;  %vm380_vm2 = vweird.f32 %v3488_v18 }
  0x4c   :  { %335 = vmatpush.bf16.msra.mxu0 %v2732_v2  ;;  %v2744_v49 = vld [vmem:[#allocation12 + $0x44] sm:$0xf]  ;;  %v2195_v50 = vld [vmem:[#allocation12 + $0x48] sm:$0xf0]  ;;  %v2194_v54 = vor.u32 %v2745_v47, %v2193_v46  ;;  %v2185_v58 = vld [vmem:[#allocation12 + $0x30] sm:$0xf] }
  0x4d   :  { %v377_v37 = vsub.f32 1.0, %v376_v20  ;;  %v2198_v57 = vor.u32 %v2744_v49, %v2195_v50  ;;  %v2743_v59 = vld [vmem:[#allocation12 + $0x34] sm:$0xf0]  ;;  %v2742_v61 = vld [vmem:[#allocation12 + $0x34] sm:$0xf]  ;;  %s3636_s30 = sld [smem:[#allocation43_spill]] }
  0x4e   :  { %589 = vmatpush.bf16.msra.mxu2 %v2210_v32  ;;  %v2187_v62 = vld [vmem:[#allocation12 + $0x38] sm:$0xf0]  ;;  %v2186_v1 = vor.u32 %v2743_v59, %v2185_v58  ;;  %v2177_v38 = vld [vmem:[#allocation12 + $0x20] sm:$0xf]  ;;  %v2741_v39 = vld [vmem:[#allocation12 + $0x24] sm:$0xf0] }
  0x4f   :  { %607 = vmatpush.bf16.msra.mxu3 %v2214_v34  ;;  %v378_v48 = vmul.f32 %v3488_v18, %v377_v37  ;;  %v2738_v46 = vld [vmem:[#allocation12 + $0x14] sm:$0xf]  ;;  %v2161_v50 = vld [vmem:[#allocation12] sm:$0xf]  ;;  %v2767_v58 = vld [vmem:[#allocation14 + $0x74] sm:$0xf0] }
  0x50   :  { %336 = vmatpush.bf16.msra.mxu0 %v2731_v3  ;;  %v2190_v3 = vor.u32 %v2742_v61, %v2187_v62  ;;  %v2345_v59 = vld [vmem:[#allocation14 + $0xf0] sm:$0xf]  ;;  %v2783_v61 = vld [vmem:[#allocation14 + $0xf4] sm:$0xf0]  ;;  %v2766_v62 = vld [vmem:[#allocation14 + $0x74] sm:$0xf] }
  0x51   :  { %v379_v60 = vadd.f32 %v3488_v18, %v378_v48  ;;  %v2171_v48 = vld [vmem:[#allocation12 + $0x18] sm:$0xf0]  ;;  %v2346_v0 = vor.u32 %v2783_v61, %v2345_v59  ;;  %v2774_v59 = vld [vmem:[#allocation14 + $0xb4] sm:$0xf]  ;;  %s3305_s23 = smov [#allocation24]   ;;  %s3637_s15 = sld [smem:[#allocation44_spill]] }
  0x52   :  { %590 = vmatpush.bf16.msra.mxu2 %v2202_v42  ;;  %v2179_v42 = vld [vmem:[#allocation12 + $0x28] sm:$0xf0]  ;;  %v2174_v49 = vor.u32 %v2738_v46, %v2171_v48 }
  0x53   :  { %608 = vmatpush.bf16.msra.mxu3 %v2206_v45  ;;  %v2739_v45 = vld [vmem:[#allocation12 + $0x14] sm:$0xf0]  ;;  %s2081_s29 = sshll.u32 %s3636_s30, 4  ;;  %s2082_s29 = int_to_ptr.hbm [resolvable:$true] %s2081_s29 }
  0x54   :  { %337 = vmatpush.bf16.msra.mxu0 %v2730_v4  ;;  %v381_v4 = vsel %vm380_vm2, %v3488_v18, %v379_v60 }
  0x56   :  { %591 = vmatpush.bf16.msra.mxu2 %v2194_v54  ;;  %v2163_v54 = vld [vmem:[#allocation12 + $0x8] sm:$0xf0] }
  0x57   :  { %609 = vmatpush.bf16.msra.mxu3 %v2198_v57  ;;  %v2281_v57 = vld [vmem:[#allocation14 + $0x70] sm:$0xf]  ;;  %s2090_s17 = sshll.u32 %s3637_s15, 4  ;;  %s2091_s17 = int_to_ptr.hbm [resolvable:$true] %s2090_s17 }
  0x58   :  { %338 = vmatpush.bf16.msra.mxu0 %v2729_v5  ;;  %v2282_v60 = vor.u32 %v2767_v58, %v2281_v57 }
  0x5a   :  { %592 = vmatpush.bf16.msra.mxu2 %v2186_v1 }
  0x5b   :  { %610 = vmatpush.bf16.msra.mxu3 %v2190_v3  ;;  %v2347_v3 = vld [vmem:[#allocation14 + $0xf8] sm:$0xf0] }
  0x5c   :  { %339 = vmatpush.bf16.msra.mxu0 %v2728_v6  ;;  %v2914_v6 = vpop.eup %2913 }
  0x5d   :  { %vm405_vm3 = vweird.f32 %v2914_v6 }
  0x60   :  { %340 = vmatpush.bf16.msra.mxu0 %v2727_v7 }
  0x63   :  { %341 = vmatmul.bf16.vlgmr.msra.gmra.mxu0 %v2726_v8  ;;  %v444_v8 = vld [vmem:[#allocation6 + $0x8] sm:$0xf] }
  0x64   :  { %850 = vmatpush.bf16.msrb.mxu0 %v2346_v0  ;;  %v2305_v0 = vld [vmem:[#allocation14 + $0xa0] sm:$0xf] }
  0x73   :  { %346 = vmatmul.bf16.gmra.mxu0 %v282_v11 }
  0xe0   :  { %v342_v12 = vpop.f32.mrf.mxu0 }
  0xe1   :  { %v3484_v16 = vadd.f32 %v2907_v14, %v342_v12  ;;  %v401_v12 = vmul.f32 23.0, %v2914_v6 }
  0xe3   :  { %v402_v21 = vsub.f32 1.0, %v401_v12  ;;  %v2275_v12 = vld [vmem:[#allocation14 + $0x68] sm:$0xf0] }
  0xe5   :  { %v403_v24 = vmul.f32 %v2914_v6, %v402_v21  ;;  %v2763_v21 = vld [vmem:[#allocation14 + $0x54] sm:$0xf0] }
  0xe7   :  { %v404_v26 = vadd.f32 %v2914_v6, %v403_v24  ;;  %v2779_v24 = vld [vmem:[#allocation14 + $0xd4] sm:$0xf0] }
  0xe8   :  { %v344_v15 = vpop.f32.mrf.mxu0 }
  0xe9   :  { %v3486_v17 = vadd.f32 %v2907_v14, %v344_v15  ;;  %v452_v15 = vunpack.c.l.b16 %v444_v8  ;;  %v406_v28 = vsel %vm405_vm3, %v2914_v6, %v404_v26  ;;  %v2765_v6 = vld [vmem:[#allocation14 + $0x64] sm:$0xf0]  ;;  %v2267_v26 = vld [vmem:[#allocation14 + $0x58] sm:$0xf0]  ;;  %vm419_vm3 = vcmask 1040384  }
  0xea   :  { %v2781_v8 = vld [vmem:[#allocation14 + $0xe4] sm:$0xf0] }
  0xeb   :  { %v367_v19 = vadd.f32 %v3486_v17, %v3484_v16  ;;  %v445_v53 = vpack.c.bf16 %v3486_v17, %v3484_v16  ;;  %v3506_v18 = vpack.c.b16 %v452_v15, %v452_v15 }
  0xf0   :  { %v347_v31 = vpop.f32.mrf.mxu0 }
  0xf1   :  { %v348_v33 = vadd.f32 %v2907_v14, %v347_v31 }
  0xf3   :  { %v368_v40 = vadd.f32 %v367_v19, %v348_v33  ;;  %v446_v41 = vpack.c.bf16 %v348_v33, %v348_v33 }
  0xf5   :  { %v369_v43 = vrot.slane %v368_v40, 4  ;;  %v464_v44 = vsel %vm462_vm0, %v446_v41, 0  ;;  %v2178_v41 = vor.u32 %v2741_v39, %v2177_v38  ;;  %v2776_v39 = vld [vmem:[#allocation14 + $0xc4] sm:$0xf] }
  0xf6   :  { %472 = vmatpush.bf16.msra.mxu1 %v464_v44  ;;  %v2169_v44 = vld [vmem:[#allocation12 + $0x10] sm:$0xf] }
  0xf7   :  { %v370_v51 = vadd.f32 %v369_v43, %v368_v40  ;;  %v2740_v40 = vld [vmem:[#allocation12 + $0x24] sm:$0xf]  ;;  %593 = vmatpush.bf16.msra.mxu2 %v2178_v41  ;;  %v2170_v47 = vor.u32 %v2739_v45, %v2169_v44 }
  0xf8   :  { %v349_v52 = vpop.f32.mrf.mxu0  ;;  %v2182_v43 = vor.u32 %v2740_v40, %v2179_v42  ;;  %v2323_v40 = vld [vmem:[#allocation14 + $0xc8] sm:$0xf0] }
  0xf9   :  { %v371_v55 = vrot.slane %v370_v51, 2  ;;  %v2736_v52 = vld [vmem:[#allocation12 + $0x4] sm:$0xf]  ;;  %v2326_v45 = vor.u32 %v2776_v39, %v2323_v40 }
  0xfa   :  { %473 = vmatpush.bf16.msra.mxu1 %v445_v53  ;;  %611 = vmatpush.bf16.msra.mxu3 %v2182_v43 }
  0xfb   :  { %v372_v63 = vadd.f32 %v371_v55, %v370_v51  ;;  %594 = vmatpush.bf16.msra.mxu2 %v2170_v47  ;;  %v2737_v51 = vld [vmem:[#allocation12 + $0x4] sm:$0xf0]  ;;  %v2166_v55 = vor.u32 %v2736_v52, %v2163_v54  ;;  %v2758_v54 = vld [vmem:[#allocation14 + $0x34] sm:$0xf] }
  0xfc   :  { %v2162_v53 = vor.u32 %v2737_v51, %v2161_v50  ;;  %v2759_v50 = vld [vmem:[#allocation14 + $0x34] sm:$0xf0]  ;;  %v2313_v51 = vld [vmem:[#allocation14 + $0xb0] sm:$0xf] }
  0xfd   :  { %v373_v2 = vrot.slane %v372_v63, 1  ;;  %2157 = vmatmul.msk.bf16.vlgmr.msra.gmra.mxu1 %vm455_vm1, %v3497_v56 }
  0xfe   :  { %612 = vmatpush.bf16.msra.mxu3 %v2174_v49  ;;  %832 = vmatpush.bf16.msrb.mxu1 %v2282_v60  ;;  %v2249_v49 = vld [vmem:[#allocation14 + $0x30] sm:$0xf]  ;;  %v2315_v60 = vld [vmem:[#allocation14 + $0xb8] sm:$0xf0] }
  0xff   :  { %v374_v5 = vadd.f32 %v373_v2, %v372_v63  ;;  %595 = vmatpush.bf16.msra.mxu2 %v2162_v53  ;;  %v2283_v63 = vld [vmem:[#allocation14 + $0x78] sm:$0xf0]  ;;  %v2782_v2 = vld [vmem:[#allocation14 + $0xf4] sm:$0xf]  ;;  %v2250_v52 = vor.u32 %v2759_v50, %v2249_v49  ;;  %v2775_v53 = vld [vmem:[#allocation14 + $0xb4] sm:$0xf0]  ;;  %v2318_v61 = vor.u32 %v2774_v59, %v2315_v60 }
 0x100   :  { %v2286_v1 = vor.u32 %v2766_v62, %v2283_v63  ;;  %v2314_v57 = vor.u32 %v2775_v53, %v2313_v51  ;;  %v2241_v62 = vld [vmem:[#allocation14 + $0x20] sm:$0xf]  ;;  %v2757_v63 = vld [vmem:[#allocation14 + $0x24] sm:$0xf0] }
 0x101   :  { %v382_v7 = vmul.f32 %v381_v4, %v374_v5  ;;  %v2273_v4 = vld [vmem:[#allocation14 + $0x60] sm:$0xf]  ;;  %v2350_v5 = vor.u32 %v2782_v2, %v2347_v3  ;;  %v2773_v2 = vld [vmem:[#allocation14 + $0xa4] sm:$0xf0]  ;;  %v2756_v3 = vld [vmem:[#allocation14 + $0x24] sm:$0xf] }
 0x102   :  { %613 = vmatpush.bf16.msra.mxu3 %v2166_v55  ;;  %v2251_v55 = vld [vmem:[#allocation14 + $0x38] sm:$0xf0] }
 0x103   :  { %v383_v9 = vsub.f32 %v3484_v16, %v382_v7  ;;  %v384_v10 = vsub.f32 %v3486_v17, %v382_v7  ;;  %v385_v11 = vsub.f32 %v348_v33, %v382_v7  ;;  %v412_v35 = vmul.f32 %v382_v7, %v382_v7  ;;  %v2337_v7 = vld [vmem:[#allocation14 + $0xe0] sm:$0xf]  ;;  %868 = vmatpush.bf16.msrb.mxu2 %v2286_v1 }
 0x104   :  { %v2254_v58 = vor.u32 %v2758_v54, %v2251_v55  ;;  %v2242_v1 = vor.u32 %v2757_v63, %v2241_v62 }
 0x105   :  { %v389_v13 = vmul.f32 %v383_v9, %v383_v9  ;;  %v390_v14 = vmul.f32 %v384_v10, %v384_v10  ;;  %v391_v19 = vmul.f32 %v385_v11, %v385_v11  ;;  %v2274_v9 = vor.u32 %v2765_v6, %v2273_v4  ;;  %v2764_v11 = vld [vmem:[#allocation14 + $0x64] sm:$0xf]  ;;  %v2243_v4 = vld [vmem:[#allocation14 + $0x28] sm:$0xf0] }
 0x106   :  { %v2338_v10 = vor.u32 %v2781_v8, %v2337_v7  ;;  %886 = vmatpush.bf16.msrb.mxu3 %v2350_v5  ;;  %v2278_v15 = vor.u32 %v2764_v11, %v2275_v12  ;;  %v2306_v5 = vor.u32 %v2773_v2, %v2305_v0  ;;  %v2246_v6 = vor.u32 %v2756_v3, %v2243_v4  ;;  %v2772_v7 = vld [vmem:[#allocation14 + $0xa4] sm:$0xf]  ;;  %v2307_v8 = vld [vmem:[#allocation14 + $0xa8] sm:$0xf0]  ;;  %v2755_v11 = vld [vmem:[#allocation14 + $0x14] sm:$0xf0] }
 0x107   :  { %v392_v20 = vadd.f32 %v390_v14, %v389_v13  ;;  %v2780_v13 = vld [vmem:[#allocation14 + $0xe4] sm:$0xf]  ;;  %833 = vmatpush.bf16.msrb.mxu1 %v2274_v9  ;;  %v2310_v9 = vor.u32 %v2772_v7, %v2307_v8  ;;  %v2297_v12 = vld [vmem:[#allocation14 + $0x90] sm:$0xf] }
 0x108   :  { %851 = vmatpush.bf16.msrb.mxu0 %v2338_v10  ;;  %869 = vmatpush.bf16.msrb.mxu2 %v2278_v15  ;;  %v2233_v10 = vld [vmem:[#allocation14 + $0x10] sm:$0xf]  ;;  %v2754_v15 = vld [vmem:[#allocation14 + $0x14] sm:$0xf] }
 0x109   :  { %v393_v22 = vadd.f32 %v392_v20, %v391_v19  ;;  %v2339_v19 = vld [vmem:[#allocation14 + $0xe8] sm:$0xf0]  ;;  %v2265_v20 = vld [vmem:[#allocation14 + $0x50] sm:$0xf] }
 0x10b   :  { %v394_v23 = vrot.slane %v393_v22, 4 }
 0x10d   :  { %v395_v25 = vadd.f32 %v394_v23, %v393_v22  ;;  %2158 = vmatmul.msk.bf16.gmra.mxu1 %vm455_vm1, %v3506_v18  ;;  %v2342_v22 = vor.u32 %v2780_v13, %v2339_v19  ;;  %v2329_v23 = vld [vmem:[#allocation14 + $0xd0] sm:$0xf]  ;;  %v2234_v13 = vor.u32 %v2755_v11, %v2233_v10  ;;  %v2235_v19 = vld [vmem:[#allocation14 + $0x18] sm:$0xf0] }
 0x10f   :  { %v396_v16 = vrot.slane %v395_v25, 2  ;;  %887 = vmatpush.bf16.msrb.mxu3 %v2342_v22  ;;  %v2770_v22 = vld [vmem:[#allocation14 + $0x94] sm:$0xf] }
 0x111   :  { %v397_v17 = vadd.f32 %v396_v16, %v395_v25  ;;  %v2762_v25 = vld [vmem:[#allocation14 + $0x54] sm:$0xf]  ;;  %v2266_v16 = vor.u32 %v2763_v21, %v2265_v20  ;;  %v2238_v21 = vor.u32 %v2754_v15, %v2235_v19 }
 0x113   :  { %v398_v27 = vrot.slane %v397_v17, 1  ;;  %834 = vmatpush.bf16.msrb.mxu1 %v2266_v16  ;;  %v2753_v16 = vld [vmem:[#allocation14 + $0x4] sm:$0xf0] }
 0x115   :  { %v399_v29 = vadd.f32 %v398_v27, %v397_v17  ;;  %v2778_v17 = vld [vmem:[#allocation14 + $0xd4] sm:$0xf]  ;;  %v2331_v27 = vld [vmem:[#allocation14 + $0xd8] sm:$0xf0] }
 0x117   :  { %v407_v30 = vmul.f32 %v406_v28, %v399_v29  ;;  %v2330_v28 = vor.u32 %v2779_v24, %v2329_v23  ;;  %v2270_v29 = vor.u32 %v2762_v25, %v2267_v26  ;;  %v2299_v23 = vld [vmem:[#allocation14 + $0x98] sm:$0xf0]  ;;  %v2225_v25 = vld [vmem:[#allocation14] sm:$0xf] }
 0x118   :  { %v2302_v24 = vor.u32 %v2770_v22, %v2299_v23  ;;  %v2289_v26 = vld [vmem:[#allocation14 + $0x80] sm:$0xf] }
 0x119   :  { %v408_v31 = vadd.f32 1e-12, %v407_v30  ;;  %852 = vmatpush.bf16.msrb.mxu0 %v2330_v28  ;;  %870 = vmatpush.bf16.msrb.mxu2 %v2270_v29  ;;  %v2752_v28 = vld [vmem:[#allocation14 + $0x4] sm:$0xf]  ;;  %v2227_v29 = vld [vmem:[#allocation14 + $0x8] sm:$0xf0] }
 0x11b   :  { %2915 = vlog2.f32 %v408_v31  ;;  %v2761_v31 = vld [vmem:[#allocation14 + $0x44] sm:$0xf0] }
 0x121   :  { %v2916_v32 = vpop.eup %2915 }
 0x122   :  { %v410_v33 = vmul.f32 0.6931472, %v2916_v32  ;;  %v2334_v32 = vor.u32 %v2778_v17, %v2331_v27  ;;  %v2226_v17 = vor.u32 %v2753_v16, %v2225_v25  ;;  %v2769_v27 = vld [vmem:[#allocation14 + $0x84] sm:$0xf0] }
 0x124   :  { %v411_v34 = vadd.f32 1.0, %v410_v33  ;;  %v2321_v33 = vld [vmem:[#allocation14 + $0xc0] sm:$0xf]  ;;  %888 = vmatpush.bf16.msrb.mxu3 %v2334_v32  ;;  %v2768_v32 = vld [vmem:[#allocation14 + $0x84] sm:$0xf] }
 0x126   :  { %v413_v36 = vsub.f32 %v411_v34, %v412_v35  ;;  %v2777_v34 = vld [vmem:[#allocation14 + $0xc4] sm:$0xf0]  ;;  %v2760_v35 = vld [vmem:[#allocation14 + $0x44] sm:$0xf] }
 0x127   :  { %v2322_v42 = vor.u32 %v2777_v34, %v2321_v33  ;;  %v2291_v33 = vld [vmem:[#allocation14 + $0x88] sm:$0xf0] }
 0x128   :  { %v3510_v37 = vsub.f32 %v413_v36, %v407_v30  ;;  %v2257_v30 = vld [vmem:[#allocation14 + $0x40] sm:$0xf]  ;;  %v2259_v36 = vld [vmem:[#allocation14 + $0x48] sm:$0xf0]  ;;  %889 = vmatpush.bf16.msrb.mxu3 %v2326_v45  ;;  %v2294_v34 = vor.u32 %v2768_v32, %v2291_v33 }
 0x129   :  { %v2258_v38 = vor.u32 %v2761_v31, %v2257_v30  ;;  %v2262_v43 = vor.u32 %v2760_v35, %v2259_v36  ;;  %853 = vmatpush.bf16.msrb.mxu0 %v2322_v42  ;;  %v2290_v30 = vor.u32 %v2769_v27, %v2289_v26  ;;  %v2230_v31 = vor.u32 %v2752_v28, %v2227_v29  ;;  %v502_v35 = vld [vmem:[%s3603_s6] sm:$0x3]  ;;  %v2413_v29 = vld [vmem:[#allocation15 + $0x70] sm:$0xf] }
 0x12a   :  { %v504_v39 = vperm.slane %v502_v35, 0  ;;  %v505_v40 = vperm.slane %v502_v35, 1 }
 0x12b   :  { %835 = vmatpush.bf16.msrb.mxu1 %v2258_v38  ;;  %871 = vmatpush.bf16.msrb.mxu2 %v2262_v43 }
 0x12c   :  { %890 = vmatpush.bf16.msrb.mxu3 %v2318_v61 }
 0x12d   :  { %854 = vmatpush.bf16.msrb.mxu0 %v2314_v57 }
 0x12f   :  { %836 = vmatpush.bf16.msrb.mxu1 %v2250_v52  ;;  %872 = vmatpush.bf16.msrb.mxu2 %v2254_v58 }
 0x130   :  { %891 = vmatpush.bf16.msrb.mxu3 %v2310_v9 }
 0x131   :  { %855 = vmatpush.bf16.msrb.mxu0 %v2306_v5 }
 0x133   :  { %837 = vmatpush.bf16.msrb.mxu1 %v2242_v1  ;;  %873 = vmatpush.bf16.msrb.mxu2 %v2246_v6  ;;  %v666_v6 = vld [vmem:[%s3605_s8] sm:$0x3]  ;;  %s3307_s8 = smov [#allocation25]  }
 0x134   :  { %892 = vmatpush.bf16.msrb.mxu3 %v2302_v24  ;;  %v668_v7 = vperm.slane %v666_v6, 0  ;;  %v669_v15 = vperm.slane %v666_v6, 1  ;;  %v2793_v6 = vld [vmem:[#allocation15 + $0x44] sm:$0xf0] }
 0x137   :  { %838 = vmatpush.bf16.msrb.mxu1 %v2234_v13  ;;  %874 = vmatpush.bf16.msrb.mxu2 %v2238_v21 }
 0x138   :  { %893 = vmatpush.bf16.msrb.mxu3 %v2294_v34 }
 0x13b   :  { %839 = vmatpush.bf16.msrb.mxu1 %v2226_v17  ;;  %875 = vmatpush.bf16.msrb.mxu2 %v2230_v31  ;;  %v2798_v31 = vld [vmem:[#allocation15 + $0x74] sm:$0xf] }
 0x17a   :  { %v475_v14 = vpop.f32.mrf.mxu1 }
 0x182   :  { %v477_v41 = vpop.f32.mrf.mxu1 }
 0x183   :  { %v484_v44 = vpack.c.bf16 %v477_v41, %v475_v14  ;;  %v2771_v14 = vld [vmem:[#allocation14 + $0x94] sm:$0xf0] }
 0x184   :  { %v2298_v20 = vor.u32 %v2771_v14, %v2297_v12 }
 0x185   :  { %596 = vmatmul.bf16.vlgmr.msra.gmra.mxu2 %v484_v44  ;;  %614 = vmatmul.bf16.vlgmr.msra.gmra.mxu3 %v484_v44 }
 0x186   :  { %856 = vmatpush.bf16.msrb.mxu0 %v2298_v20 }
 0x18a   :  { %v480_v46 = vpop.f32.mrf.mxu1  ;;  %857 = vmatpush.bf16.msrb.mxu0 %v2290_v30  ;;  %v2799_v30 = vld [vmem:[#allocation15 + $0x74] sm:$0xf0] }
 0x18b   :  { %v485_v47 = vpack.c.bf16 %v480_v46, %v480_v46  ;;  %v2414_v35 = vor.u32 %v2799_v30, %v2413_v29  ;;  %v2790_v30 = vld [vmem:[#allocation15 + $0x34] sm:$0xf] }
 0x18d   :  { %1158 = vmatpush.bf16.msra.mxu2 %v2414_v35  ;;  %v2455_v35 = vld [vmem:[#allocation15 + $0xc8] sm:$0xf0] }
 0x192   :  { %v482_v48 = vpop.f32.mrf.mxu1 }
 0x195   :  { %601 = vmatmul.bf16.gmra.mxu2 %v485_v47  ;;  %619 = vmatmul.bf16.gmra.mxu3 %v485_v47 }
 0x208   :  { %v597_v36 = vpop.f32.mrf.mxu2  ;;  %v615_v38 = vpop.f32.mrf.mxu3 }
 0x209   :  { %v598_v41 = vadd.f32 %v597_v36, %v504_v39  ;;  %v616_v42 = vadd.f32 %v615_v38, %v505_v40  ;;  %v2415_v36 = vld [vmem:[#allocation15 + $0x78] sm:$0xf0]  ;;  %v2405_v38 = vld [vmem:[#allocation15 + $0x60] sm:$0xf] }
 0x20b   :  { %v624_v47 = vmax.f32 %v598_v41, 0.0  ;;  %v625_v48 = vmax.f32 %v616_v42, 0.0  ;;  %v2797_v41 = vld [vmem:[#allocation15 + $0x64] sm:$0xf0]  ;;  %v2418_v42 = vor.u32 %v2798_v31, %v2415_v36  ;;  %v2383_v31 = vld [vmem:[#allocation15 + $0x38] sm:$0xf0] }
 0x210   :  { %v599_v43 = vpop.f32.mrf.mxu2  ;;  %v617_v44 = vpop.f32.mrf.mxu3 }
 0x211   :  { %v600_v45 = vadd.f32 %v599_v43, %v504_v39  ;;  %v618_v46 = vadd.f32 %v617_v44, %v505_v40  ;;  %v2406_v43 = vor.u32 %v2797_v41, %v2405_v38  ;;  %v2796_v44 = vld [vmem:[#allocation15 + $0x64] sm:$0xf]  ;;  %v2789_v38 = vld [vmem:[#allocation15 + $0x24] sm:$0xf0]  ;;  %v2375_v41 = vld [vmem:[#allocation15 + $0x28] sm:$0xf0] }
 0x213   :  { %v626_v49 = vmax.f32 %v600_v45, 0.0  ;;  %v627_v50 = vmax.f32 %v618_v46, 0.0  ;;  %v2477_v45 = vld [vmem:[#allocation15 + $0xf0] sm:$0xf]  ;;  %v2815_v46 = vld [vmem:[#allocation15 + $0xf4] sm:$0xf0]  ;;  %1159 = vmatpush.bf16.msra.mxu2 %v2406_v43 }
 0x214   :  { %v2445_v43 = vld [vmem:[#allocation15 + $0xb0] sm:$0xf] }
 0x215   :  { %v630_v51 = vpack.c.bf16 %v626_v49, %v624_v47  ;;  %v631_v52 = vpack.c.bf16 %v627_v50, %v625_v48  ;;  %v2407_v49 = vld [vmem:[#allocation15 + $0x68] sm:$0xf0]  ;;  %v2478_v50 = vor.u32 %v2815_v46, %v2477_v45  ;;  %v2806_v45 = vld [vmem:[#allocation15 + $0xb4] sm:$0xf] }
 0x217   :  { %840 = vmatmul.bf16.vlgmr.msrb.gmra.mxu1 %v630_v51  ;;  %858 = vmatmul.bf16.vlgmr.msrb.gmra.mxu0 %v631_v52 }
 0x218   :  { %876 = vmatmul.bf16.vlgmr.msrb.gmra.mxu2 %v630_v51  ;;  %894 = vmatmul.bf16.vlgmr.msrb.gmra.mxu3 %v631_v52  ;;  %v602_v53 = vpop.f32.mrf.mxu2  ;;  %v620_v54 = vpop.f32.mrf.mxu3  ;;  %v2397_v51 = vld [vmem:[#allocation15 + $0x50] sm:$0xf] }
 0x219   :  { %v603_v55 = vadd.f32 %v602_v53, %v504_v39  ;;  %v621_v57 = vadd.f32 %v620_v54, %v505_v40  ;;  %v2795_v54 = vld [vmem:[#allocation15 + $0x54] sm:$0xf0]  ;;  %1176 = vmatpush.bf16.msra.mxu3 %v2478_v50 }
 0x21b   :  { %v628_v58 = vmax.f32 %v603_v55, 0.0  ;;  %v629_v59 = vmax.f32 %v621_v57, 0.0  ;;  %v2814_v57 = vld [vmem:[#allocation15 + $0xf4] sm:$0xf] }
 0x21d   :  { %v632_v62 = vpack.c.bf16 %v628_v58, %v628_v58  ;;  %v633_v63 = vpack.c.bf16 %v629_v59, %v629_v59  ;;  %v2469_v58 = vld [vmem:[#allocation15 + $0xe0] sm:$0xf]  ;;  %v2813_v59 = vld [vmem:[#allocation15 + $0xe4] sm:$0xf0] }
 0x220   :  { %v604_v60 = vpop.f32.mrf.mxu2  ;;  %v622_v61 = vpop.f32.mrf.mxu3 }
 0x227   :  { %845 = vmatmul.bf16.gmra.mxu1 %v632_v62  ;;  %863 = vmatmul.bf16.gmra.mxu0 %v633_v63 }
 0x228   :  { %881 = vmatmul.bf16.gmra.mxu2 %v632_v62  ;;  %899 = vmatmul.bf16.gmra.mxu3 %v633_v63  ;;  %v2410_v62 = vor.u32 %v2796_v44, %v2407_v49  ;;  %v2479_v63 = vld [vmem:[#allocation15 + $0xf8] sm:$0xf0]  ;;  %v2807_v44 = vld [vmem:[#allocation15 + $0xb4] sm:$0xf0] }
 0x229   :  { %v2446_v46 = vor.u32 %v2807_v44, %v2445_v43  ;;  %v2787_v49 = vld [vmem:[#allocation15 + $0x14] sm:$0xf0] }
 0x294   :  { %v841_v0 = vpop.f32.mrf.mxu1  ;;  %v859_v1 = vpop.f32.mrf.mxu0 }
 0x295   :  { %v842_v14 = vadd.f32 %v841_v0, %v668_v7  ;;  %v2398_v0 = vor.u32 %v2795_v54, %v2397_v51  ;;  %v2437_v54 = vld [vmem:[#allocation15 + $0xa0] sm:$0xf] }
 0x297   :  { %v860_v23 = vadd.f32 %v859_v1, %v842_v14  ;;  %v2794_v1 = vld [vmem:[#allocation15 + $0x54] sm:$0xf]  ;;  %1160 = vmatpush.bf16.msra.mxu2 %v2398_v0 }
 0x299   :  { %v904_v39 = vmax.f32 %v860_v23, 0.0  ;;  %v2381_v23 = vld [vmem:[#allocation15 + $0x30] sm:$0xf] }
 0x29b   :  { %v877_v2 = vpop.f32.mrf.mxu2  ;;  %v895_v3 = vpop.f32.mrf.mxu3 }
 0x29c   :  { %v843_v4 = vpop.f32.mrf.mxu1  ;;  %v861_v5 = vpop.f32.mrf.mxu0  ;;  %v878_v32 = vadd.f32 %v877_v2, %v669_v15  ;;  %v2399_v2 = vld [vmem:[#allocation15 + $0x58] sm:$0xf0] }
 0x29d   :  { %v844_v8 = vadd.f32 %v843_v4, %v668_v7  ;;  %v2470_v4 = vor.u32 %v2813_v59, %v2469_v58  ;;  %v2439_v59 = vld [vmem:[#allocation15 + $0xa8] sm:$0xf0] }
 0x29e   :  { %v896_v52 = vadd.f32 %v895_v3, %v878_v32 }
 0x29f   :  { %v862_v19 = vadd.f32 %v861_v5, %v844_v8  ;;  %v2389_v5 = vld [vmem:[#allocation15 + $0x40] sm:$0xf]  ;;  %v2461_v8 = vld [vmem:[#allocation15 + $0xd0] sm:$0xf]  ;;  %1177 = vmatpush.bf16.msra.mxu3 %v2470_v4 }
 0x2a0   :  { %v2429_v4 = vld [vmem:[#allocation15 + $0x90] sm:$0xf] }
 0x2a1   :  { %v906_v24 = vmax.f32 %v862_v19, 0.0  ;;  %v2390_v19 = vor.u32 %v2793_v6, %v2389_v5  ;;  %v2802_v5 = vld [vmem:[#allocation15 + $0x94] sm:$0xf] }
 0x2a3   :  { %v879_v9 = vpop.f32.mrf.mxu2  ;;  %v897_v10 = vpop.f32.mrf.mxu3  ;;  %v910_v47 = vpack.c.bf16 %v906_v24, %v904_v39  ;;  %v2791_v24 = vld [vmem:[#allocation15 + $0x34] sm:$0xf0]  ;;  %1161 = vmatpush.bf16.msra.mxu2 %v2390_v19  ;;  %v2788_v39 = vld [vmem:[#allocation15 + $0x24] sm:$0xf]  ;;  %v2605_v19 = vld [vmem:[#allocation17 + $0xf0] sm:$0xf] }
 0x2a4   :  { %v846_v11 = vpop.f32.mrf.mxu1  ;;  %v864_v12 = vpop.f32.mrf.mxu0  ;;  %v880_v21 = vadd.f32 %v879_v9, %v669_v15  ;;  %v2811_v9 = vld [vmem:[#allocation15 + $0xd4] sm:$0xf0]  ;;  %v2382_v29 = vor.u32 %v2791_v24, %v2381_v23  ;;  %v2607_v23 = vld [vmem:[#allocation17 + $0xf8] sm:$0xf0]  ;;  %v2597_v24 = vld [vmem:[#allocation17 + $0xe0] sm:$0xf] }
 0x2a5   :  { %v847_v13 = vadd.f32 %v846_v11, %v668_v7  ;;  %v905_v7 = vmax.f32 %v896_v52, 0.0  ;;  %v2812_v11 = vld [vmem:[#allocation15 + $0xe4] sm:$0xf]  ;;  %v2786_v52 = vld [vmem:[#allocation15 + $0x14] sm:$0xf] }
 0x2a6   :  { %v898_v33 = vadd.f32 %v897_v10, %v880_v21  ;;  %v2482_v10 = vor.u32 %v2814_v57, %v2479_v63  ;;  %v2391_v21 = vld [vmem:[#allocation15 + $0x48] sm:$0xf0]  ;;  %v2804_v57 = vld [vmem:[#allocation15 + $0xa4] sm:$0xf] }
 0x2a7   :  { %v865_v20 = vadd.f32 %v864_v12, %v847_v13  ;;  %v2471_v12 = vld [vmem:[#allocation15 + $0xe8] sm:$0xf0]  ;;  %v2462_v13 = vor.u32 %v2811_v9, %v2461_v8  ;;  %1162 = vmatpush.bf16.msra.mxu2 %v2382_v29  ;;  %v2784_v63 = vld [vmem:[#allocation15 + $0x4] sm:$0xf]  ;;  %v2421_v9 = vld [vmem:[#allocation15 + $0x80] sm:$0xf] }
 0x2a8   :  { %v907_v53 = vmax.f32 %v898_v33, 0.0  ;;  %v2386_v33 = vor.u32 %v2790_v30, %v2383_v31  ;;  %v2831_v29 = vld [vmem:[#allocation17 + $0x74] sm:$0xf0]  ;;  %v2830_v30 = vld [vmem:[#allocation17 + $0x74] sm:$0xf] }
 0x2a9   :  { %v908_v22 = vmax.f32 %v865_v20, 0.0  ;;  %v2792_v20 = vld [vmem:[#allocation15 + $0x44] sm:$0xf]  ;;  %1178 = vmatpush.bf16.msra.mxu3 %v2462_v13  ;;  %v2423_v13 = vld [vmem:[#allocation15 + $0x88] sm:$0xf0] }
 0x2aa   :  { %v911_v14 = vpack.c.bf16 %v907_v53, %v905_v7  ;;  %v2367_v53 = vld [vmem:[#allocation15 + $0x18] sm:$0xf0] }
 0x2ab   :  { %v912_v25 = vpack.c.bf16 %v908_v22, %v908_v22  ;;  %v882_v16 = vpop.f32.mrf.mxu2  ;;  %v900_v26 = vpop.f32.mrf.mxu3  ;;  %v2453_v22 = vld [vmem:[#allocation15 + $0xc0] sm:$0xf]  ;;  %v2431_v7 = vld [vmem:[#allocation15 + $0x98] sm:$0xf0] }
 0x2ac   :  { %v883_v17 = vadd.f32 %v882_v16, %v669_v15  ;;  %v848_v27 = vpop.f32.mrf.mxu1  ;;  %v866_v28 = vpop.f32.mrf.mxu0  ;;  %v2402_v15 = vor.u32 %v2794_v1, %v2399_v2  ;;  %v2474_v16 = vor.u32 %v2812_v11, %v2471_v12  ;;  %v2359_v1 = vld [vmem:[#allocation15 + $0x8] sm:$0xf0]  ;;  %v2434_v8 = vor.u32 %v2802_v5, %v2431_v7  ;;  %v2800_v11 = vld [vmem:[#allocation15 + $0x84] sm:$0xf]  ;;  %v2543_v31 = vld [vmem:[#allocation17 + $0x78] sm:$0xf0] }
 0x2ad   :  { %v915_v34 = vsel %vm462_vm0, %v912_v25, 0  ;;  %v2809_v25 = vld [vmem:[#allocation15 + $0xc4] sm:$0xf0]  ;;  %v2810_v27 = vld [vmem:[#allocation15 + $0xd4] sm:$0xf]  ;;  %v2362_v2 = vor.u32 %v2784_v63, %v2359_v1 }
 0x2ae   :  { %v901_v40 = vadd.f32 %v900_v26, %v883_v17  ;;  %926 = vmatpush.bf16.msra.mxu1 %v915_v34  ;;  %v2454_v26 = vor.u32 %v2809_v25, %v2453_v22  ;;  %v2394_v17 = vor.u32 %v2792_v20, %v2391_v21  ;;  %v2463_v28 = vld [vmem:[#allocation15 + $0xd8] sm:$0xf0]  ;;  %v2808_v34 = vld [vmem:[#allocation15 + $0xc4] sm:$0xf]  ;;  %v2847_v20 = vld [vmem:[#allocation17 + $0xf4] sm:$0xf0] }
 0x2af   :  { %v2466_v32 = vor.u32 %v2810_v27, %v2463_v28  ;;  %v2458_v36 = vor.u32 %v2808_v34, %v2455_v35  ;;  %v2846_v21 = vld [vmem:[#allocation17 + $0xf4] sm:$0xf]  ;;  %v2606_v22 = vor.u32 %v2847_v20, %v2605_v19  ;;  %v2845_v25 = vld [vmem:[#allocation17 + $0xe4] sm:$0xf0]  ;;  %v2541_v27 = vld [vmem:[#allocation17 + $0x70] sm:$0xf]  ;;  %v2546_v34 = vor.u32 %v2830_v30, %v2543_v31 }
 0x2b0   :  { %v909_v48 = vmax.f32 %v901_v40, 0.0  ;;  %1179 = vmatpush.bf16.msra.mxu3 %v2454_v26  ;;  %v2844_v26 = vld [vmem:[#allocation17 + $0xe4] sm:$0xf]  ;;  %v2598_v28 = vor.u32 %v2845_v25, %v2597_v24  ;;  %v2589_v35 = vld [vmem:[#allocation17 + $0xd0] sm:$0xf] }
 0x2b1   :  { %v2525_v63 = vld [vmem:[#allocation17 + $0x50] sm:$0xf]  ;;  %v2839_v7 = vld [vmem:[#allocation17 + $0xb4] sm:$0xf0]  ;;  %v2519_v19 = vld [vmem:[#allocation17 + $0x48] sm:$0xf0] }
 0x2b2   :  { %v913_v55 = vpack.c.bf16 %v909_v48, %v909_v48  ;;  %927 = vmatpush.bf16.msra.mxu1 %v910_v47  ;;  %v2447_v47 = vld [vmem:[#allocation15 + $0xb8] sm:$0xf0]  ;;  %v2365_v48 = vld [vmem:[#allocation15 + $0x10] sm:$0xf]  ;;  %v2567_v25 = vld [vmem:[#allocation17 + $0xa8] sm:$0xf0] }
 0x2b3   :  { %v884_v60 = vpop.f32.mrf.mxu2  ;;  %v902_v61 = vpop.f32.mrf.mxu3  ;;  %v2450_v50 = vor.u32 %v2806_v45, %v2447_v47  ;;  %v2366_v51 = vor.u32 %v2787_v49, %v2365_v48  ;;  %v2557_v31 = vld [vmem:[#allocation17 + $0x90] sm:$0xf] }
 0x2b4   :  { %v918_v3 = vsel %vm462_vm0, %v913_v55, 0  ;;  %1180 = vmatpush.bf16.msra.mxu3 %v2446_v46  ;;  %v2805_v55 = vld [vmem:[#allocation15 + $0xa4] sm:$0xf0]  ;;  %v2442_v60 = vor.u32 %v2804_v57, %v2439_v59  ;;  %v2357_v61 = vld [vmem:[#allocation15] sm:$0xf] }
 0x2b5   :  { %944 = vmatpush.bf16.msra.mxu0 %v918_v3  ;;  %2351 = vmatmul.msk.bf16.vlgmr.msra.gmra.mxu1 %vm455_vm1, %v3497_v56  ;;  %v2438_v58 = vor.u32 %v2805_v55, %v2437_v54  ;;  %v2803_v3 = vld [vmem:[#allocation15 + $0x94] sm:$0xf0]  ;;  %v2535_v55 = vld [vmem:[#allocation17 + $0x68] sm:$0xf0]  ;;  %v2841_v59 = vld [vmem:[#allocation17 + $0xc4] sm:$0xf0] }
 0x2b6   :  { %1194 = vmatpush.bf16.msrb.mxu1 %v2418_v42  ;;  %v2378_v42 = vor.u32 %v2788_v39, %v2375_v41  ;;  %v2430_v6 = vor.u32 %v2803_v3, %v2429_v4  ;;  %v2591_v39 = vld [vmem:[#allocation17 + $0xd8] sm:$0xf0]  ;;  %v2826_v4 = vld [vmem:[#allocation17 + $0x54] sm:$0xf] }
 0x2b7   :  { %v2527_v3 = vld [vmem:[#allocation17 + $0x58] sm:$0xf0] }
 0x2b8   :  { %1181 = vmatpush.bf16.msra.mxu3 %v2438_v58  ;;  %v2581_v58 = vld [vmem:[#allocation17 + $0xc0] sm:$0xf]  ;;  %v2530_v5 = vor.u32 %v2826_v4, %v2527_v3 }
 0x2b9   :  { %945 = vmatpush.bf16.msra.mxu0 %v911_v14  ;;  %v2426_v14 = vor.u32 %v2800_v11, %v2423_v13  ;;  %v2825_v13 = vld [vmem:[#allocation17 + $0x44] sm:$0xf0] }
 0x2ba   :  { %1195 = vmatpush.bf16.msrb.mxu1 %v2410_v62  ;;  %v2785_v62 = vld [vmem:[#allocation15 + $0x4] sm:$0xf0] }
 0x2bb   :  { %v2358_v0 = vor.u32 %v2785_v62, %v2357_v61  ;;  %v2582_v61 = vor.u32 %v2841_v59, %v2581_v58  ;;  %v2583_v62 = vld [vmem:[#allocation17 + $0xc8] sm:$0xf0] }
 0x2bc   :  { %2353 = vmatmul.msk.bf16.vlgmr.msra.gmra.mxu0 %vm455_vm1, %v3497_v56  ;;  %v2373_v56 = vld [vmem:[#allocation15 + $0x20] sm:$0xf]  ;;  %1182 = vmatpush.bf16.msra.mxu3 %v2430_v6  ;;  %v2573_v6 = vld [vmem:[#allocation17 + $0xb0] sm:$0xf]  ;;  %v2487_v59 = vld [vmem:[#allocation17 + $0x8] sm:$0xf0] }
 0x2bd   :  { %1212 = vmatpush.bf16.msrb.mxu0 %v2482_v10  ;;  %v2374_v40 = vor.u32 %v2789_v38, %v2373_v56  ;;  %v2801_v10 = vld [vmem:[#allocation15 + $0x84] sm:$0xf0]  ;;  %v2842_v38 = vld [vmem:[#allocation17 + $0xd4] sm:$0xf] }
 0x2be   :  { %1196 = vmatpush.bf16.msrb.mxu1 %v2402_v15  ;;  %v2422_v12 = vor.u32 %v2801_v10, %v2421_v9  ;;  %v2594_v43 = vor.u32 %v2842_v38, %v2591_v39  ;;  %v2574_v9 = vor.u32 %v2839_v7, %v2573_v6  ;;  %v2575_v10 = vld [vmem:[#allocation17 + $0xb8] sm:$0xf0]  ;;  %v2821_v38 = vld [vmem:[#allocation17 + $0x24] sm:$0xf0]  ;;  %v2820_v39 = vld [vmem:[#allocation17 + $0x24] sm:$0xf] }
 0x2bf   :  { %1163 = vmatpush.bf16.msra.mxu2 %v2374_v40 }
 0x2c0   :  { %1183 = vmatpush.bf16.msra.mxu3 %v2422_v12  ;;  %v2517_v12 = vld [vmem:[#allocation17 + $0x40] sm:$0xf] }
 0x2c1   :  { %1213 = vmatpush.bf16.msrb.mxu0 %v2474_v16  ;;  %v2610_v16 = vor.u32 %v2846_v21, %v2607_v23  ;;  %v2565_v21 = vld [vmem:[#allocation17 + $0xa0] sm:$0xf]  ;;  %v2836_v23 = vld [vmem:[#allocation17 + $0xa4] sm:$0xf] }
 0x2c2   :  { %1197 = vmatpush.bf16.msrb.mxu1 %v2394_v17  ;;  %v2599_v17 = vld [vmem:[#allocation17 + $0xe8] sm:$0xf0] }
 0x2c3   :  { %1164 = vmatpush.bf16.msra.mxu2 %v2366_v51 }
 0x2c4   :  { %1456 = vmatpush.bf16.msrb.mxu3 %v2606_v22  ;;  %v2837_v22 = vld [vmem:[#allocation17 + $0xa4] sm:$0xf0] }
 0x2c5   :  { %1214 = vmatpush.bf16.msrb.mxu0 %v2466_v32  ;;  %2352 = vmatmul.msk.bf16.gmra.mxu1 %vm455_vm1, %v3506_v18  ;;  %v2602_v32 = vor.u32 %v2844_v26, %v2599_v17  ;;  %v2566_v24 = vor.u32 %v2837_v22, %v2565_v21  ;;  %v2509_v26 = vld [vmem:[#allocation17 + $0x30] sm:$0xf]  ;;  %v2823_v17 = vld [vmem:[#allocation17 + $0x34] sm:$0xf0] }
 0x2c6   :  { %1198 = vmatpush.bf16.msrb.mxu1 %v2386_v33  ;;  %v2542_v33 = vor.u32 %v2831_v29, %v2541_v27  ;;  %v2822_v27 = vld [vmem:[#allocation17 + $0x34] sm:$0xf]  ;;  %v2511_v29 = vld [vmem:[#allocation17 + $0x38] sm:$0xf0] }
 0x2c7   :  { %1165 = vmatpush.bf16.msra.mxu2 %v2358_v0  ;;  %v2827_v0 = vld [vmem:[#allocation17 + $0x54] sm:$0xf0]  ;;  %v2514_v30 = vor.u32 %v2822_v27, %v2511_v29 }
 0x2c8   :  { %1457 = vmatpush.bf16.msrb.mxu3 %v2598_v28  ;;  %v2510_v28 = vor.u32 %v2823_v17, %v2509_v26 }
 0x2c9   :  { %1215 = vmatpush.bf16.msrb.mxu0 %v2458_v36  ;;  %v2843_v36 = vld [vmem:[#allocation17 + $0xd4] sm:$0xf0] }
 0x2ca   :  { %1199 = vmatpush.bf16.msrb.mxu1 %v2378_v42  ;;  %v2590_v42 = vor.u32 %v2843_v36, %v2589_v35  ;;  %v2559_v35 = vld [vmem:[#allocation17 + $0x98] sm:$0xf0] }
 0x2cb   :  { %1438 = vmatpush.bf16.msrb.mxu2 %v2542_v33  ;;  %v2834_v33 = vld [vmem:[#allocation17 + $0x94] sm:$0xf] }
 0x2cc   :  { %2354 = vmatmul.msk.bf16.gmra.mxu0 %vm455_vm1, %v3506_v18  ;;  %v2370_v18 = vor.u32 %v2786_v52, %v2367_v53  ;;  %1458 = vmatpush.bf16.msrb.mxu3 %v2590_v42  ;;  %v2533_v52 = vld [vmem:[#allocation17 + $0x60] sm:$0xf]  ;;  %v2829_v53 = vld [vmem:[#allocation17 + $0x64] sm:$0xf0]  ;;  %v2562_v36 = vor.u32 %v2834_v33, %v2559_v35 }
 0x2cd   :  { %1216 = vmatpush.bf16.msrb.mxu0 %v2450_v50  ;;  %v2534_v54 = vor.u32 %v2829_v53, %v2533_v52  ;;  %v2495_v53 = vld [vmem:[#allocation17 + $0x18] sm:$0xf0] }
 0x2ce   :  { %1200 = vmatpush.bf16.msrb.mxu1 %v2370_v18  ;;  %v2828_v18 = vld [vmem:[#allocation17 + $0x64] sm:$0xf] }
 0x2cf   :  { %v2538_v57 = vor.u32 %v2828_v18, %v2535_v55  ;;  %1439 = vmatpush.bf16.msrb.mxu2 %v2534_v54  ;;  %v2485_v54 = vld [vmem:[#allocation17] sm:$0xf]  ;;  %v2817_v55 = vld [vmem:[#allocation17 + $0x4] sm:$0xf0] }
 0x2d0   :  { %1459 = vmatpush.bf16.msrb.mxu3 %v2582_v61  ;;  %v2486_v58 = vor.u32 %v2817_v55, %v2485_v54 }
 0x2d1   :  { %1217 = vmatpush.bf16.msrb.mxu0 %v2442_v60  ;;  %v2840_v60 = vld [vmem:[#allocation17 + $0xc4] sm:$0xf] }
 0x2d2   :  { %1201 = vmatpush.bf16.msrb.mxu1 %v2362_v2  ;;  %v2586_v1 = vor.u32 %v2840_v60, %v2583_v62  ;;  %v2526_v2 = vor.u32 %v2827_v0, %v2525_v63  ;;  %v992_v62 = vld [vmem:[%s3607_s10] sm:$0x3] }
 0x2d4   :  { %1440 = vmatpush.bf16.msrb.mxu2 %v2526_v2  ;;  %1460 = vmatpush.bf16.msrb.mxu3 %v2574_v9 }
 0x2d5   :  { %1218 = vmatpush.bf16.msrb.mxu0 %v2434_v8  ;;  %v2838_v8 = vld [vmem:[#allocation17 + $0xb4] sm:$0xf] }
 0x2d6   :  { %1474 = vmatpush.bf16.msra.mxu1 %v2546_v34  ;;  %v2578_v11 = vor.u32 %v2838_v8, %v2575_v10 }
 0x2d8   :  { %1461 = vmatpush.bf16.msrb.mxu3 %v2566_v24 }
 0x2d9   :  { %1219 = vmatpush.bf16.msrb.mxu0 %v2426_v14  ;;  %v2824_v14 = vld [vmem:[#allocation17 + $0x44] sm:$0xf] }
 0x2da   :  { %1475 = vmatpush.bf16.msra.mxu1 %v2538_v57  ;;  %v2522_v20 = vor.u32 %v2824_v14, %v2519_v19  ;;  %v2816_v57 = vld [vmem:[#allocation17 + $0x4] sm:$0xf] }
 0x2db   :  { %v2490_v60 = vor.u32 %v2816_v57, %v2487_v59 }
 0x2dd   :  { %1492 = vmatpush.bf16.msra.mxu0 %v2610_v16  ;;  %v2570_v16 = vor.u32 %v2836_v23, %v2567_v25 }
 0x2de   :  { %1476 = vmatpush.bf16.msra.mxu1 %v2530_v5  ;;  %v994_v5 = vperm.slane %v992_v62, 0 }
 0x2e1   :  { %1493 = vmatpush.bf16.msra.mxu0 %v2602_v32  ;;  %v2835_v32 = vld [vmem:[#allocation17 + $0x94] sm:$0xf0] }
 0x2e2   :  { %1477 = vmatpush.bf16.msra.mxu1 %v2522_v20  ;;  %v2558_v34 = vor.u32 %v2835_v32, %v2557_v31 }
 0x2e4   :  { %1462 = vmatpush.bf16.msrb.mxu3 %v2558_v34 }
 0x2e5   :  { %1494 = vmatpush.bf16.msra.mxu0 %v2594_v43  ;;  %v2549_v43 = vld [vmem:[#allocation17 + $0x80] sm:$0xf] }
 0x2e6   :  { %1478 = vmatpush.bf16.msra.mxu1 %v2514_v30 }
 0x2e9   :  { %1495 = vmatpush.bf16.msra.mxu0 %v2586_v1  ;;  %v995_v1 = vperm.slane %v992_v62, 1 }
 0x2ed   :  { %1496 = vmatpush.bf16.msra.mxu0 %v2578_v11 }
 0x2f1   :  { %1497 = vmatpush.bf16.msra.mxu0 %v2570_v16 }
 0x2f5   :  { %1498 = vmatpush.bf16.msra.mxu0 %v2562_v36 }
 0x332   :  { %v929_v15 = vpop.f32.mrf.mxu1 }
 0x339   :  { %v947_v56 = vpop.f32.mrf.mxu0 }
 0x33a   :  { %v931_v40 = vpop.f32.mrf.mxu1 }
 0x33b   :  { %v956_v41 = vpack.c.bf16 %v931_v40, %v929_v15  ;;  %v2518_v15 = vor.u32 %v2825_v13, %v2517_v12 }
 0x33d   :  { %1166 = vmatmul.bf16.vlgmr.msra.gmra.mxu2 %v956_v41  ;;  %1202 = vmatmul.bf16.vlgmr.msrb.gmra.mxu1 %v956_v41  ;;  %v2503_v41 = vld [vmem:[#allocation17 + $0x28] sm:$0xf0] }
 0x33e   :  { %1441 = vmatpush.bf16.msrb.mxu2 %v2518_v15  ;;  %v2506_v42 = vor.u32 %v2820_v39, %v2503_v41 }
 0x340   :  { %1479 = vmatpush.bf16.msra.mxu1 %v2506_v42 }
 0x341   :  { %v949_v44 = vpop.f32.mrf.mxu0 }
 0x342   :  { %v957_v45 = vpack.c.bf16 %v949_v44, %v947_v56  ;;  %v934_v46 = vpop.f32.mrf.mxu1  ;;  %1442 = vmatpush.bf16.msrb.mxu2 %v2510_v28  ;;  %v2501_v56 = vld [vmem:[#allocation17 + $0x20] sm:$0xf]  ;;  %v2833_v44 = vld [vmem:[#allocation17 + $0x84] sm:$0xf0] }
 0x343   :  { %v958_v47 = vpack.c.bf16 %v934_v46, %v934_v46  ;;  %v2502_v40 = vor.u32 %v2821_v38, %v2501_v56  ;;  %v2550_v46 = vor.u32 %v2833_v44, %v2549_v43  ;;  %v2855_v43 = vld [vmem:[#allocation18 + $0x38] sm:$0xff] }
 0x344   :  { %1184 = vmatmul.bf16.vlgmr.msra.gmra.mxu3 %v957_v45  ;;  %1220 = vmatmul.bf16.vlgmr.msrb.gmra.mxu0 %v957_v45  ;;  %v2832_v45 = vld [vmem:[#allocation17 + $0x84] sm:$0xf] }
 0x345   :  { %1463 = vmatpush.bf16.msrb.mxu3 %v2550_v46  ;;  %v2854_v46 = vld [vmem:[#allocation18 + $0x30] sm:$0xff] }
 0x346   :  { %1443 = vmatpush.bf16.msrb.mxu2 %v2502_v40 }
 0x349   :  { %v952_v48 = vpop.f32.mrf.mxu0 }
 0x34a   :  { %v936_v49 = vpop.f32.mrf.mxu1  ;;  %v959_v50 = vpack.c.bf16 %v952_v48, %v952_v48 }
 0x34b   :  { %v2493_v49 = vld [vmem:[#allocation17 + $0x10] sm:$0xf] }
 0x34d   :  { %1171 = vmatmul.bf16.gmra.mxu2 %v958_v47  ;;  %1207 = vmatmul.bf16.gmra.mxu1 %v958_v47  ;;  %v2551_v47 = vld [vmem:[#allocation17 + $0x88] sm:$0xf0] }
 0x34e   :  { %v2554_v48 = vor.u32 %v2832_v45, %v2551_v47  ;;  %v2863_v45 = vld [vmem:[#allocation20 + $0x38] sm:$0xff] }
 0x350   :  { %1499 = vmatpush.bf16.msra.mxu0 %v2554_v48 }
 0x351   :  { %v954_v51 = vpop.f32.mrf.mxu0 }
 0x352   :  { %v2818_v51 = vld [vmem:[#allocation17 + $0x14] sm:$0xf] }
 0x353   :  { %v2498_v18 = vor.u32 %v2818_v51, %v2495_v53  ;;  %v1272_v51 = vld [vmem:[%s3609_s12] sm:$0x3] }
 0x354   :  { %1189 = vmatmul.bf16.gmra.mxu3 %v959_v50  ;;  %1225 = vmatmul.bf16.gmra.mxu0 %v959_v50  ;;  %v2819_v50 = vld [vmem:[#allocation17 + $0x14] sm:$0xf0]  ;;  %v1275_v53 = vperm.slane %v1272_v51, 1 }
 0x355   :  { %v2494_v52 = vor.u32 %v2819_v50, %v2493_v49  ;;  %1480 = vmatpush.bf16.msra.mxu1 %v2498_v18  ;;  %1702 = vmatpush.bf16.msrb.mxu0 %v2863_v45  ;;  %v2853_v50 = vld [vmem:[#allocation18 + $0x28] sm:$0xff] }
 0x357   :  { %1444 = vmatpush.bf16.msrb.mxu2 %v2494_v52 }
 0x359   :  { %1481 = vmatpush.bf16.msra.mxu1 %v2490_v60 }
 0x35b   :  { %1445 = vmatpush.bf16.msrb.mxu2 %v2486_v58 }
 0x35d   :  { %1619 = vmatpush.bf16.msrb.mxu1 %v2855_v43  ;;  %v2908_v43 = vld [vmem:[%s3611_s14] ss:$0 sm:$0xff] }
 0x361   :  { %1620 = vmatpush.bf16.msrb.mxu1 %v2854_v46 }
 0x365   :  { %1621 = vmatpush.bf16.msrb.mxu1 %v2853_v50 }
 0x3ba   :  { %v1203_v61 = vpop.f32.mrf.mxu1 }
 0x3bb   :  { %v1204_v4 = vadd.f32 %v1203_v61, %v995_v1  ;;  %v1274_v61 = vperm.slane %v1272_v51, 0 }
 0x3c0   :  { %v1167_v63 = vpop.f32.mrf.mxu2 }
 0x3c1   :  { %v1221_v0 = vpop.f32.mrf.mxu0  ;;  %v1168_v12 = vadd.f32 %v1167_v63, %v994_v5 }
 0x3c2   :  { %v1205_v2 = vpop.f32.mrf.mxu1  ;;  %v1222_v6 = vadd.f32 %v1221_v0, %v1204_v4 }
 0x3c3   :  { %v1206_v7 = vadd.f32 %v1205_v2, %v995_v1 }
 0x3c4   :  { %v1231_v13 = vmax.f32 %v1222_v6, 0.0 }
 0x3c7   :  { %v1185_v3 = vpop.f32.mrf.mxu3 }
 0x3c8   :  { %v1169_v8 = vpop.f32.mrf.mxu2  ;;  %v1186_v15 = vadd.f32 %v1185_v3, %v1168_v12  ;;  %v1514_v12 = vld [vmem:[#allocation8] sm:$0x3] }
 0x3c9   :  { %v1223_v9 = vpop.f32.mrf.mxu0  ;;  %v1170_v19 = vadd.f32 %v1169_v8, %v994_v5 }
 0x3ca   :  { %v1224_v10 = vadd.f32 %v1223_v9, %v1206_v7  ;;  %v1208_v11 = vpop.f32.mrf.mxu1  ;;  %v1230_v16 = vmax.f32 %v1186_v15, 0.0 }
 0x3cb   :  { %v1209_v23 = vadd.f32 %v1208_v11, %v995_v1 }
 0x3cc   :  { %v1233_v14 = vmax.f32 %v1224_v10, 0.0 }
 0x3ce   :  { %v1237_v20 = vpack.c.bf16 %v1233_v14, %v1231_v13 }
 0x3cf   :  { %v1187_v21 = vpop.f32.mrf.mxu3 }
 0x3d0   :  { %v1188_v22 = vadd.f32 %v1187_v21, %v1170_v19  ;;  %1464 = vmatmul.bf16.vlgmr.msrb.gmra.mxu3 %v1237_v20  ;;  %1500 = vmatmul.bf16.vlgmr.msra.gmra.mxu0 %v1237_v20  ;;  %v1172_v24 = vpop.f32.mrf.mxu2  ;;  %v2862_v20 = vld [vmem:[#allocation20 + $0x30] sm:$0xff]  ;;  %v2861_v21 = vld [vmem:[#allocation20 + $0x28] sm:$0xff] }
 0x3d1   :  { %v1226_v25 = vpop.f32.mrf.mxu0  ;;  %v1173_v29 = vadd.f32 %v1172_v24, %v994_v5  ;;  %1703 = vmatpush.bf16.msrb.mxu0 %v2862_v20  ;;  %v2851_v24 = vld [vmem:[#allocation18 + $0x18] sm:$0xff] }
 0x3d2   :  { %v1232_v26 = vmax.f32 %v1188_v22, 0.0  ;;  %v1210_v17 = vpop.f32.mrf.mxu1  ;;  %v1227_v28 = vadd.f32 %v1226_v25, %v1209_v23  ;;  %v2852_v22 = vld [vmem:[#allocation18 + $0x20] sm:$0xff]  ;;  %v2859_v25 = vld [vmem:[#allocation20 + $0x18] sm:$0xff] }
 0x3d3   :  { %v2860_v23 = vld [vmem:[#allocation20 + $0x20] sm:$0xff]  ;;  %1622 = vmatpush.bf16.msrb.mxu1 %v2852_v22  ;;  %v2849_v17 = vld [vmem:[#allocation18 + $0x8] sm:$0xff] }
 0x3d4   :  { %v1236_v27 = vpack.c.bf16 %v1232_v26, %v1230_v16  ;;  %v1235_v31 = vmax.f32 %v1227_v28, 0.0  ;;  %v2850_v16 = vld [vmem:[#allocation18 + $0x10] sm:$0xff]  ;;  %v2848_v28 = vld [vmem:[#allocation18] sm:$0xff] }
 0x3d5   :  { %1704 = vmatpush.bf16.msrb.mxu0 %v2861_v21  ;;  %v2858_v26 = vld [vmem:[#allocation20 + $0x10] sm:$0xff] }
 0x3d6   :  { %1446 = vmatmul.bf16.vlgmr.msrb.gmra.mxu2 %v1236_v27  ;;  %1482 = vmatmul.bf16.vlgmr.msra.gmra.mxu1 %v1236_v27  ;;  %v1239_v35 = vpack.c.bf16 %v1235_v31, %v1235_v31  ;;  %v2857_v27 = vld [vmem:[#allocation20 + $0x8] sm:$0xff] }
 0x3d7   :  { %v1190_v30 = vpop.f32.mrf.mxu3  ;;  %1623 = vmatpush.bf16.msrb.mxu1 %v2851_v24 }
 0x3d8   :  { %v1174_v32 = vpop.f32.mrf.mxu2  ;;  %v1191_v34 = vadd.f32 %v1190_v30, %v1173_v29  ;;  %v2856_v29 = vld [vmem:[#allocation20] sm:$0xff] }
 0x3d9   :  { %v1228_v33 = vpop.f32.mrf.mxu0  ;;  %1705 = vmatpush.bf16.msrb.mxu0 %v2860_v23 }
 0x3da   :  { %v1234_v36 = vmax.f32 %v1191_v34, 0.0 }
 0x3db   :  { %1624 = vmatpush.bf16.msrb.mxu1 %v2850_v16 }
 0x3dc   :  { %v1238_v38 = vpack.c.bf16 %v1234_v36, %v1234_v36 }
 0x3dd   :  { %1706 = vmatpush.bf16.msrb.mxu0 %v2859_v25 }
 0x3df   :  { %v1192_v56 = vpop.f32.mrf.mxu3  ;;  %1625 = vmatpush.bf16.msrb.mxu1 %v2849_v17 }
 0x3e0   :  { %1469 = vmatmul.bf16.gmra.mxu3 %v1239_v35  ;;  %1505 = vmatmul.bf16.gmra.mxu0 %v1239_v35 }
 0x3e1   :  { %1707 = vmatpush.bf16.msrb.mxu0 %v2858_v26 }
 0x3e3   :  { %1626 = vmatpush.bf16.msrb.mxu1 %v2848_v28 }
 0x3e5   :  { %1708 = vmatpush.bf16.msrb.mxu0 %v2857_v27 }
 0x3e6   :  { %1451 = vmatmul.bf16.gmra.mxu2 %v1238_v38  ;;  %1487 = vmatmul.bf16.gmra.mxu1 %v1238_v38 }
 0x3e9   :  { %1709 = vmatpush.bf16.msrb.mxu0 %v2856_v29 }
 0x44d   :  { %v1501_v39 = vpop.f32.mrf.mxu0 }
 0x453   :  { %v1465_v40 = vpop.f32.mrf.mxu3  ;;  %v1483_v41 = vpop.f32.mrf.mxu1 }
 0x454   :  { %v1484_v60 = vadd.f32 %v1483_v41, %v1275_v53  ;;  %v2909_v41 = vld [vmem:[%s3613_s16] ss:$0 sm:$0xff] }
 0x455   :  { %v1503_v42 = vpop.f32.mrf.mxu0 }
 0x456   :  { %v1502_v4 = vadd.f32 %v1501_v39, %v1484_v60 }
 0x459   :  { %v1447_v44 = vpop.f32.mrf.mxu2 }
 0x45a   :  { %v1448_v8 = vadd.f32 %v1447_v44, %v1274_v61 }
 0x45b   :  { %v1467_v47 = vpop.f32.mrf.mxu3  ;;  %v1485_v48 = vpop.f32.mrf.mxu1 }
 0x45c   :  { %v1486_v57 = vadd.f32 %v1485_v48, %v1275_v53  ;;  %v1466_v14 = vadd.f32 %v1465_v40, %v1448_v8 }
 0x45d   :  { %v1506_v49 = vpop.f32.mrf.mxu0 }
 0x45e   :  { %v1504_v63 = vadd.f32 %v1503_v42, %v1486_v57 }
 0x460   :  { %v1511_v9 = vpack.c.bf16 %v1504_v63, %v1502_v4 }
 0x461   :  { %v1449_v52 = vpop.f32.mrf.mxu2 }
 0x462   :  { %v1450_v3 = vadd.f32 %v1449_v52, %v1274_v61 }
 0x463   :  { %v1470_v18 = vpop.f32.mrf.mxu3  ;;  %v1488_v54 = vpop.f32.mrf.mxu1 }
 0x464   :  { %v1489_v55 = vadd.f32 %v1488_v54, %v1275_v53  ;;  %v1468_v11 = vadd.f32 %v1467_v47, %v1450_v3 }
 0x465   :  { %v1508_v58 = vpop.f32.mrf.mxu0 }
 0x466   :  { %v1507_v59 = vadd.f32 %v1506_v49, %v1489_v55  ;;  %v1510_v19 = vpack.c.bf16 %v1468_v11, %v1466_v14 }
 0x468   :  { %v1513_v62 = vpack.c.bf16 %v1507_v59, %v1507_v59 }
 0x469   :  { %v1452_v0 = vpop.f32.mrf.mxu2 }
 0x46a   :  { %v1453_v1 = vadd.f32 %v1452_v0, %v1274_v61  ;;  %v1522_v2 = vsel %vm462_vm0, %v1513_v62, 0 }
 0x46b   :  { %v1472_v5 = vpop.f32.mrf.mxu3  ;;  %v1490_v6 = vpop.f32.mrf.mxu1  ;;  %1543 = vmatpush.bf16.msra.mxu3 %v1522_v2 }
 0x46c   :  { %v1471_v7 = vadd.f32 %v1470_v18, %v1453_v1 }
 0x46e   :  { %v1512_v10 = vpack.c.bf16 %v1471_v7, %v1471_v7 }
 0x46f   :  { %1544 = vmatpush.bf16.msra.mxu3 %v1511_v9 }
 0x470   :  { %v1519_v13 = vsel %vm462_vm0, %v1512_v10, 0 }
 0x471   :  { %v1454_v15 = vpop.f32.mrf.mxu2  ;;  %1530 = vmatpush.bf16.msra.mxu2 %v1519_v13 }
 0x472   :  { %2612 = vmatmul.msk.bf16.vlgmr.msra.gmra.mxu3 %vm455_vm1, %v1514_v12 }
 0x475   :  { %1531 = vmatpush.bf16.msra.mxu2 %v1510_v19 }
 0x478   :  { %2611 = vmatmul.msk.bf16.vlgmr.msra.gmra.mxu2 %vm455_vm1, %v1514_v12  ;;  %vm1813_vm1 = vcmask 23552  }
 0x4f5   :  { %v3538_v30 = vpop.f32.mrf.mxu3 }
 0x4f6   :  { %v1633_v31 = vpack.c.bf16 %v3538_v30, %v3538_v30  ;;  %v1733_v56 = vmul.f32 %v3538_v30, %v3538_v30 }
 0x4f8   :  { %1710 = vmatmul.bf16.vlgmr.msrb.gmra.mxu0 %v1633_v31  ;;  %v1734_v39 = vsel %vm1717_vm4, %v1733_v56, 0.0 }
 0x4fb   :  { %v3542_v32 = vpop.f32.mrf.mxu2 }
 0x4fc   :  { %v1550_v33 = vpack.c.bf16 %v3542_v32, %v3542_v32  ;;  %v1716_v34 = vmul.f32 %v3542_v32, %v3542_v32 }
 0x4fd   :  { %v1548_v35 = vpop.f32.mrf.mxu3 }
 0x4fe   :  { %v1718_v36 = vsel %vm1717_vm4, %v1716_v34, 0.0  ;;  %1627 = vmatmul.bf16.vlgmr.msrb.gmra.mxu1 %v1550_v33 }
 0x4ff   :  { %1719 = vadd.xlane.f32.xlu0 %v1718_v36 }
 0x503   :  { %v1535_v38 = vpop.f32.mrf.mxu2 }
 0x507   :  { %1735 = vadd.xlane.f32.xlu0 %v1734_v39  ;;  %v415_v39 = vlaneseq }
 0x572   :  { %v1720_v40 = vpop.xlane.xlu0 %1719 }
 0x573   :  { %2917 = vrsqrt.f32 %v1720_v40  ;;  %vm1728_vm5 = vcmp.eq.f32.partialorder %v1720_v40, inf  ;;  %v1731_v61 = vand.u32 2147483648, %v1720_v40  ;;  %vm1730_vm6 = vcmp.eq.f32.partialorder %v1720_v40, 0.0 }
 0x575   :  { %v1711_v42 = vpop.f32.mrf.mxu0 }
 0x576   :  { %v1712_v44 = vadd.f32 %v2909_v41, %v1711_v42  ;;  %v416_v41 = vand.u32 127, %v415_v39 }
 0x578   :  { %v1715_v50 = vmax.f32 %v1712_v44, 0.0  ;;  %vm417_vm2 = vcmp.lt.s32.totalorder %v416_v41, 32 }
 0x579   :  { %v2918_v45 = vpop.eup %2917 }
 0x57a   :  { %v1722_v46 = vmul.f32 %v2918_v45, %v1720_v40  ;;  %v1736_v51 = vpop.xlane.xlu0 %1735 }
 0x57b   :  { %v1628_v47 = vpop.f32.mrf.mxu1  ;;  %2919 = vrsqrt.f32 %v1736_v51  ;;  %vm1744_vm7 = vcmp.eq.f32.partialorder %v1736_v51, inf  ;;  %v1747_v6 = vand.u32 2147483648, %v1736_v51  ;;  %vm1746_vm8 = vcmp.eq.f32.partialorder %v1736_v51, 0.0 }
 0x57c   :  { %v1723_v48 = vmul.f32 %v2918_v45, %v1722_v46  ;;  %v1629_v49 = vadd.f32 %v2908_v43, %v1628_v47  ;;  %v418_v43 = vsel %vm417_vm2, %v3510_v37, 0.0  ;;  %v2871_v47 = vld [vmem:[#allocation21 + $0x38] sm:$0xff]  ;;  %v2868_v37 = vld [vmem:[#allocation21 + $0x20] sm:$0xff] }
 0x57d   :  { %v1713_v52 = vpop.f32.mrf.mxu0  ;;  %v420_v44 = vsel %vm419_vm3, %v418_v43, 0.0 }
 0x57e   :  { %v1724_v53 = vmul.f32 0.5, %v1723_v48  ;;  %v1632_v18 = vmax.f32 %v1629_v49, 0.0  ;;  %v2870_v48 = vld [vmem:[#allocation21 + $0x30] sm:$0xff]  ;;  %v2867_v52 = vld [vmem:[#allocation21 + $0x18] sm:$0xff] }
 0x580   :  { %v1725_v54 = vsub.f32 1.5, %v1724_v53  ;;  %v3558_v55 = vadd.f32 %v1715_v50, %v1632_v18  ;;  %v2869_v50 = vld [vmem:[#allocation21 + $0x28] sm:$0xff]  ;;  %v2866_v53 = vld [vmem:[#allocation21 + $0x10] sm:$0xff] }
 0x581   :  { %v2920_v59 = vpop.eup %2919 }
 0x582   :  { %v1726_v57 = vmul.f32 %v2918_v45, %v1725_v54  ;;  %v1738_v62 = vmul.f32 %v2920_v59, %v1736_v51  ;;  %v2865_v54 = vld [vmem:[#allocation21 + $0x8] sm:$0xff] }
 0x583   :  { %v1630_v58 = vpop.f32.mrf.mxu1 }
 0x584   :  { %v1727_v60 = vmul.f32 %v1726_v57, %v1720_v40  ;;  %v1739_v1 = vmul.f32 %v2920_v59, %v1738_v62  ;;  %v2864_v57 = vld [vmem:[#allocation21] sm:$0xff]  ;;  %v1982_v62 = vpack.c.bf16 %v3558_v55, %v3558_v55 }
 0x586   :  { %v1729_v63 = vsel %vm1728_vm5, %v1720_v40, %v1727_v60  ;;  %v1740_v4 = vmul.f32 0.5, %v1739_v1 }
 0x587   :  { %v1732_v0 = vsel %vm1730_vm6, %v1731_v61, %v1729_v63  ;;  %v3303_v63 = vmov 32.0  }
 0x588   :  { %v1749_v2 = vadd.f32 1e-06, %v1732_v0  ;;  %v1741_v3 = vsub.f32 1.5, %v1740_v4 }
 0x58a   :  { %2921 = vrcp.f32 %v1749_v2  ;;  %v1742_v5 = vmul.f32 %v2920_v59, %v1741_v3  ;;  %v1761_v14 = vand.u32 2147483648, %v1749_v2  ;;  %v1759_v19 = vand.u32 2147483647, %v1749_v2 }
 0x58b   :  { %vm1755_vm10 = vweird.f32 %v1749_v2 }
 0x58c   :  { %v1743_v7 = vmul.f32 %v1742_v5, %v1736_v51  ;;  %v1762_v21 = vor.u32 1.1754944e-38, %v1761_v14  ;;  %vm1760_vm12 = vcmp.eq.f32.partialorder %v1759_v19, 8.507059e+37 }
 0x58e   :  { %v1745_v10 = vsel %vm1744_vm7, %v1736_v51, %v1743_v7 }
 0x58f   :  { %v1748_v11 = vsel %vm1746_vm8, %v1747_v6, %v1745_v10 }
 0x590   :  { %v2922_v8 = vpop.eup %2921  ;;  %v1765_v13 = vadd.f32 1e-06, %v1748_v11 }
 0x591   :  { %v1751_v9 = vmul.f32 %v2922_v8, %v1749_v2  ;;  %vm1756_vm9 = vweird.f32 %v2922_v8 }
 0x592   :  { %2923 = vrcp.f32 %v1765_v13  ;;  %vm1757_vm11 = vmor %vm1755_vm10, %vm1756_vm9  ;;  %v1777_v26 = vand.u32 2147483648, %v1765_v13  ;;  %vm1771_vm13 = vweird.f32 %v1765_v13  ;;  %v1775_v27 = vand.u32 2147483647, %v1765_v13 }
 0x593   :  { %v1752_v12 = vsub.f32 1.0, %v1751_v9  ;;  %2925 = vrcp.f32 %v3303_v63 }
 0x594   :  { %v1778_v29 = vor.u32 1.1754944e-38, %v1777_v26  ;;  %vm1776_vm0 = vcmp.eq.f32.partialorder %v1775_v27, 8.507059e+37 }
 0x595   :  { %v1753_v15 = vmul.f32 %v2922_v8, %v1752_v12 }
 0x597   :  { %v1754_v20 = vadd.f32 %v2922_v8, %v1753_v15 }
 0x598   :  { %v2924_v24 = vpop.eup %2923 }
 0x599   :  { %v1758_v22 = vsel %vm1757_vm11, %v2922_v8, %v1754_v20  ;;  %v1767_v16 = vmul.f32 %v2924_v24, %v1765_v13  ;;  %vm1772_vm14 = vweird.f32 %v2924_v24  ;;  %v2926_v0 = vpop.eup %2925 }
 0x59a   :  { %v1763_v23 = vsel %vm1760_vm12, %v1762_v21, %v1758_v22  ;;  %vm1773_vm15 = vmor %vm1771_vm13, %vm1772_vm14  ;;  %v432_v1 = vmul.f32 32.0, %v2926_v0 }
 0x59b   :  { %v1764_v25 = vmul.f32 %v1763_v23, %v3542_v32  ;;  %v1768_v17 = vsub.f32 1.0, %v1767_v16 }
 0x59c   :  { %v433_v2 = vsub.f32 1.0, %v432_v1 }
 0x59d   :  { %1781 = vxpose.xlu1.b32.start.end [1/1] (short) %v1764_v25, 128  ;;  %v1769_v28 = vmul.f32 %v2924_v24, %v1768_v17 }
 0x59e   :  { %v434_v6 = vmul.f32 %v2926_v0, %v433_v2 }
 0x59f   :  { %v1770_v31 = vadd.f32 %v2924_v24, %v1769_v28 }
 0x5a0   :  { %v435_v9 = vadd.f32 %v2926_v0, %v434_v6 }
 0x5a1   :  { %v1774_v33 = vsel %vm1773_vm15, %v2924_v24, %v1770_v31 }
 0x5a2   :  { %v1779_v34 = vsel %vm1776_vm0, %v1778_v29, %v1774_v33 }
 0x5a3   :  { %v1780_v35 = vmul.f32 %v1779_v34, %v3538_v30 }
 0x5a5   :  { %2677 = vmatpush.msk.msra.mxu0 %vm1717_vm4, %v1780_v35  ;;  %2872 = vmatpush.msk.msra.mxu1 %vm1717_vm4, %v1780_v35 }
 0x5a6   :  { %2873 = vmatpush.msk.msrb.mxu2 %vm1717_vm4, %v1780_v35  ;;  %2874 = vmatpush.msk.msrb.mxu3 %vm1717_vm4, %v1780_v35  ;;  %vm436_vm4 = vweird.f32 %v2926_v0 }
 0x5a7   :  { %v437_v12 = vsel %vm436_vm4, %v2926_v0, %v435_v9  ;;  %v3306_v0 = vmov 1024.0  }
 0x5a8   :  { %2051 = vmatpush.bf16.msra.mxu3 %v2871_v47  ;;  %2927 = vrcp.f32 %v3306_v0 }
 0x5ac   :  { %2052 = vmatpush.bf16.msra.mxu3 %v2870_v48 }
 0x5ae   :  { %v2928_v1 = vpop.eup %2927 }
 0x5af   :  { %v1971_v2 = vmul.f32 1024.0, %v2928_v1  ;;  %vm1975_vm5 = vweird.f32 %v2928_v1 }
 0x5b0   :  { %2053 = vmatpush.bf16.msra.mxu3 %v2869_v50 }
 0x5b4   :  { %2054 = vmatpush.bf16.msra.mxu3 %v2868_v37 }
 0x5b8   :  { %2055 = vmatpush.bf16.msra.mxu3 %v2867_v52 }
 0x5bc   :  { %2056 = vmatpush.bf16.msra.mxu3 %v2866_v53 }
 0x5c0   :  { %2057 = vmatpush.bf16.msra.mxu3 %v2865_v54 }
 0x5c4   :  { %2058 = vmatpush.bf16.msra.mxu3 %v2864_v57 }
 0x641   :  { %v1797_v32 = vpop.trf.xlu1 }
 0x642   :  { %2678 = vmatmul.msk.f32.vlgmr.msra.gmra.mxu0 %vm1813_vm1, %v1797_v32 }
 0x649   :  { %v1798_v36 = vpop.trf.xlu1 }
 0x64a   :  { %2679 = vmatmul.msk.f32.gmra.mxu0 %vm1813_vm1, %v1798_v36 }
 0x651   :  { %v1799_v56 = vpop.trf.xlu1 }
 0x652   :  { %2680 = vmatmul.msk.f32.vlgmr.msra.gmra.mxu1 %vm1813_vm1, %v1799_v56 }
 0x659   :  { %v1800_v38 = vpop.trf.xlu1 }
 0x65a   :  { %2681 = vmatmul.msk.f32.gmra.mxu1 %vm1813_vm1, %v1800_v38 }
 0x661   :  { %v1801_v30 = vpop.trf.xlu1 }
 0x662   :  { %2682 = vmatmul.msk.f32.gmra.mxu1 %vm1813_vm1, %v1801_v30 }
 0x669   :  { %v1802_v40 = vpop.trf.xlu1 }
 0x66a   :  { %2683 = vmatmul.msk.f32.gmra.mxu1 %vm1813_vm1, %v1802_v40 }
 0x671   :  { %v1803_v42 = vpop.trf.xlu1 }
 0x672   :  { %2684 = vmatmul.msk.f32.gmra.mxu1 %vm1813_vm1, %v1803_v42 }
 0x675   :  { %421 = vadd.xlane.f32.xlu1 %v420_v44 }
 0x679   :  { %v1804_v45 = vpop.trf.xlu1 }
 0x67a   :  { %2685 = vmatmul.msk.f32.vlgmr.msrb.gmra.mxu2 %vm1813_vm1, %v1804_v45 }
 0x681   :  { %v1805_v46 = vpop.trf.xlu1 }
 0x682   :  { %2686 = vmatmul.msk.f32.gmra.mxu2 %vm1813_vm1, %v1805_v46 }
 0x689   :  { %v1806_v49 = vpop.trf.xlu1 }
 0x68a   :  { %2687 = vmatmul.msk.f32.gmra.mxu2 %vm1813_vm1, %v1806_v49 }
 0x691   :  { %v1807_v51 = vpop.trf.xlu1 }
 0x692   :  { %2688 = vmatmul.msk.f32.gmra.mxu2 %vm1813_vm1, %v1807_v51 }
 0x699   :  { %v1808_v18 = vpop.trf.xlu1 }
 0x69a   :  { %2689 = vmatmul.msk.f32.gmra.mxu2 %vm1813_vm1, %v1808_v18 }
 0x6a1   :  { %v1809_v58 = vpop.trf.xlu1 }
 0x6a2   :  { %2690 = vmatmul.msk.f32.gmra.mxu2 %vm1813_vm1, %v1809_v58 }
 0x6a9   :  { %v1810_v59 = vpop.trf.xlu1 }
 0x6aa   :  { %2691 = vmatmul.msk.f32.vlgmr.msrb.gmra.mxu3 %vm1813_vm1, %v1810_v59 }
 0x6b1   :  { %v1811_v60 = vpop.trf.xlu1 }
 0x6b2   :  { %2692 = vmatmul.msk.f32.gmra.mxu3 %vm1813_vm1, %v1811_v60  ;;  %v2910_v60 = vld [vmem:[%s3615_s18] ss:$0 sm:$0xff] }
 0x6b9   :  { %v1812_v61 = vpop.trf.xlu1 }
 0x6ba   :  { %2693 = vmatmul.msk.f32.gmra.mxu3 %vm1813_vm1, %v1812_v61 }
 0x6bf   :  { %v1882_v19 = vpop.f32.mrf.mxu0 }
 0x6c0   :  { %v1930_v26 = vmul.f32 %v1882_v19, %v1882_v19 }
 0x6c2   :  { %2059 = vmatmul.bf16.vlgmr.msra.gmra.mxu3 %v1982_v62 }
 0x6c7   :  { %v1885_v22 = vpop.f32.mrf.mxu0 }
 0x6c8   :  { %v1931_v25 = vmul.f32 %v1885_v22, %v1885_v22 }
 0x6ca   :  { %v1946_v27 = vadd.f32 %v1931_v25, %v1930_v26 }
 0x6cf   :  { %v1888_v55 = vpop.f32.mrf.mxu1 }
 0x6d0   :  { %v1932_v16 = vmul.f32 %v1888_v55, %v1888_v55 }
 0x6d2   :  { %v1947_v28 = vadd.f32 %v1946_v27, %v1932_v16 }
 0x6d7   :  { %v1891_v14 = vpop.f32.mrf.mxu1 }
 0x6d8   :  { %v1933_v17 = vmul.f32 %v1891_v14, %v1891_v14 }
 0x6da   :  { %v1948_v33 = vadd.f32 %v1947_v28, %v1933_v17 }
 0x6df   :  { %v1894_v20 = vpop.f32.mrf.mxu1 }
 0x6e0   :  { %v1934_v29 = vmul.f32 %v1894_v20, %v1894_v20 }
 0x6e2   :  { %v1949_v32 = vadd.f32 %v1948_v33, %v1934_v29 }
 0x6e7   :  { %v1897_v23 = vpop.f32.mrf.mxu1 }
 0x6e8   :  { %v422_v4 = vpop.xlane.xlu1 %421  ;;  %v1935_v34 = vmul.f32 %v1897_v23, %v1897_v23 }
 0x6e9   :  { %v423_v3 = vrot.slane %v422_v4, 4 }
 0x6ea   :  { %v1950_v56 = vadd.f32 %v1949_v32, %v1935_v34 }
 0x6eb   :  { %v424_v5 = vadd.f32 %v423_v3, %v422_v4  ;;  %v1972_v4 = vsub.f32 1.0, %v1971_v2 }
 0x6ed   :  { %v425_v7 = vrot.slane %v424_v5, 2 }
 0x6ef   :  { %v426_v8 = vadd.f32 %v425_v7, %v424_v5  ;;  %v1900_v31 = vpop.f32.mrf.mxu1  ;;  %v1973_v7 = vmul.f32 %v2928_v1, %v1972_v4 }
 0x6f0   :  { %v1936_v36 = vmul.f32 %v1900_v31, %v1900_v31 }
 0x6f1   :  { %v427_v10 = vrot.slane %v426_v8, 1 }
 0x6f2   :  { %v1951_v39 = vadd.f32 %v1950_v56, %v1936_v36 }
 0x6f3   :  { %v428_v11 = vadd.f32 %v427_v10, %v426_v8  ;;  %v1974_v10 = vadd.f32 %v2928_v1, %v1973_v7 }
 0x6f5   :  { %2875 = vpush %v428_v11  ;;  %v1976_v55 = vsel %vm1975_vm5, %v2928_v1, %v1974_v10 }
 0x6f6   :  { %2877 = vpush %v437_v12 }
 0x6fd   :  { %v1903_v13 = vpop.f32.mrf.mxu2 }
 0x6fe   :  { %v1937_v38 = vmul.f32 %v1903_v13, %v1903_v13 }
 0x700   :  { %v1952_v41 = vadd.f32 %v1951_v39, %v1937_v38 }
 0x705   :  { %v1906_v15 = vpop.f32.mrf.mxu2 }
 0x706   :  { %v1938_v40 = vmul.f32 %v1906_v15, %v1906_v15 }
 0x708   :  { %v1953_v43 = vadd.f32 %v1952_v41, %v1938_v40 }
 0x70d   :  { %v1909_v21 = vpop.f32.mrf.mxu2 }
 0x70e   :  { %v1939_v42 = vmul.f32 %v1909_v21, %v1909_v21 }
 0x710   :  { %v1954_v46 = vadd.f32 %v1953_v43, %v1939_v42 }
 0x715   :  { %v1912_v24 = vpop.f32.mrf.mxu2 }
 0x716   :  { %v1940_v44 = vmul.f32 %v1912_v24, %v1912_v24 }
 0x718   :  { %v1955_v49 = vadd.f32 %v1954_v46, %v1940_v44 }
 0x71d   :  { %v1915_v35 = vpop.f32.mrf.mxu2 }
 0x71e   :  { %v1941_v47 = vmul.f32 %v1915_v35, %v1915_v35 }
 0x720   :  { %v1956_v37 = vadd.f32 %v1955_v49, %v1941_v47 }
 0x725   :  { %v1918_v45 = vpop.f32.mrf.mxu2 }
 0x726   :  { %s2876_s14 = spop %2875  ;;  %v1942_v50 = vmul.f32 %v1918_v45, %v1918_v45 }
 0x727   :  { %s430_s16 = smul.f32 -0.5, %s2876_s14  ;;  %s2878_s13 = spop %2877 }
 0x728   :  { %v1957_v52 = vadd.f32 %v1956_v37, %v1942_v50 }
 0x729   :  { %s439_s27 = smul.f32 %s2878_s13, %s430_s16 }
 0x72b   :  { %441 = sst [smem:[#allocation24]] %s439_s27 }
 0x72c   :  { %2084 = dma.smem_to_hbm %s3305_s23, 16, %s2082_s29, [#allocation5]  }
 0x72d   :  { %v1921_v30 = vpop.f32.mrf.mxu3 }
 0x72e   :  { %v1943_v51 = vmul.f32 %v1921_v30, %v1921_v30 }
 0x730   :  { %v1958_v18 = vadd.f32 %v1957_v52, %v1943_v51 }
 0x735   :  { %v1924_v48 = vpop.f32.mrf.mxu3 }
 0x736   :  { %v1944_v53 = vmul.f32 %v1924_v48, %v1924_v48 }
 0x738   :  { %v1959_v58 = vadd.f32 %v1958_v18, %v1944_v53 }
 0x73d   :  { %v1927_v54 = vpop.f32.mrf.mxu3 }
 0x73e   :  { %v1945_v57 = vmul.f32 %v1927_v54, %v1927_v54 }
 0x740   :  { %v1960_v59 = vadd.f32 %v1959_v58, %v1945_v57 }
 0x742   :  { %1961 = vadd.xlane.f32.xlu2 %v1960_v59 }
 0x745   :  { %v2060_v61 = vpop.f32.mrf.mxu3 }
 0x746   :  { %v2061_v62 = vadd.f32 %v2910_v60, %v2060_v61 }
 0x748   :  { %2064 = vst [vmem:[#allocation23] sm:$0x7] %v2061_v62 }
 0x749   :  { %2075 = dma.vmem_to_hbm [thread:$0]  %s2071_s3, 64, %s2073_s11, [#allocation4]  }
 0x74d   :  { %v2062_v63 = vpop.f32.mrf.mxu3 }
 0x7b5   :  { %v1962_v3 = vpop.xlane.xlu2 %1961 }
 0x7b6   :  { %v1963_v5 = vrot.slane %v1962_v3, 4 }
 0x7b8   :  { %v1964_v6 = vadd.f32 %v1963_v5, %v1962_v3 }
 0x7ba   :  { %v1965_v8 = vrot.slane %v1964_v6, 2 }
 0x7bc   :  { %v1966_v9 = vadd.f32 %v1965_v8, %v1964_v6 }
 0x7be   :  { %v1967_v11 = vrot.slane %v1966_v9, 1 }
 0x7c0   :  { %v1968_v12 = vadd.f32 %v1967_v11, %v1966_v9 }
 0x7c2   :  { %2879 = vpush %v1968_v12 }
 0x7c3   :  { %2881 = vpush %v1976_v55 }
 0x7f3   :  { %s2880_s21 = spop %2879 }
 0x7f4   :  { %s2882_s6 = spop %2881 }
 0x7f5   :  { %s1978_s22 = smul.f32 %s2882_s6, %s2880_s21 }
 0x7f7   :  { %1980 = sst [smem:[#allocation25]] %s1978_s22 }
 0x7f8   :  { %2093 = dma.smem_to_hbm %s3307_s8, 16, %s2091_s17, [#allocation26]  }
 0x7f9   :  { %3279 = dma.done.wait [#allocation4], 64  }
 0x7fa   :  { %3280 = vsyncadd [#allocation4], 4294967232 }
 0x7fb   :  { %3281 = dma.done.wait [#allocation5], 16  }
 0x7fc   :  { %3282 = vsyncadd [#allocation5], 4294967280 }
 0x7fd   :  { %3283 = dma.done.wait [#allocation26], 16  }
 0x7fe   :  { %3284 = vsyncadd [#allocation26], 4294967280 }
 0x7ff   :  { %2106 = sfence }
 0x800   :  { %2107 = vsyncpa [#allocation3], 1 }
 0x801   :  { %2108 = vsyncpa [#allocation7], 1 }
 0x802   :  { %2109 = vsyncpa [#allocation10], 1 }
 0x803   :  { %2110 = vsyncpa [#allocation13], 1 }
 0x804   :  { %2111 = vsyncpa [#allocation16], 1 }
 0x805   :  { %2112 = vsyncpa [#allocation19], 1 }
 0x806   :  { %2113 = vsyncpa [#allocation22], 1 }
 0x807   :  { %2114 = vsyncpa [#allocation4], 1 }
 0x808   :  { %2115 = vsyncpa [#allocation5], 1 }
 0x809   :  { %2116 = vsyncpa [#allocation26], 1 }

</bundles_post_ra>
